<compile_context>
chip_gen: v6e
topology: v6e:2x2x1
jax: 0.10.0
libtpu: 0.0.40
codegen_flags: <defaults>
</compile_context>

<pallas_src>
import math

import jax
import jax.numpy as jnp
from jax.experimental import pallas as pl
from jax.experimental.pallas import tpu as pltpu


# --------------------------- module forward wrapper --------------------------
def bidirectional_lstm_forward(x, params):
    """Mirrors BidirectionalLSTM.forward: x (T, B, I) -> (T, B, O)."""
    T, B_in, I = x.shape
    H = params["whh_f"].shape[1]
    O = params["emb_w"].shape[0]
    H4, H8 = 4 * H, 8 * H

    # Pad batch to a multiple of 8: full sublane utilization and 8-aligned
    # dynamic row slices inside the kernel. Padded columns are sliced off.
    B = ((B_in + 7) // 8) * 8
    if B != B_in:
        x = jnp.pad(x, ((0, 0), (0, B - B_in), (0, 0)))

    # One-time parameter reshuffling (PyTorch gate order i, f, g, o kept).
    wih_cat = jnp.concatenate([params["wih_f"].T, params["wih_b"].T], axis=1)  # (I, 8H)
    whh_f_t = params["whh_f"].T                                                # (H, 4H)
    whh_b_t = params["whh_b"].T                                                # (H, 4H)
    bias_cat = jnp.concatenate(
        [params["bih_f"] + params["bhh_f"],
         params["bih_b"] + params["bhh_b"]]).reshape(1, H8)                    # (1, 8H)
    emb_w_t = params["emb_w"].T                    # (2H, O): rows [:H] fwd, [H:] bwd
    emb_wf = emb_w_t[:H]                           # (H, O)
    emb_wb = emb_w_t[H:]                           # (H, O)
    emb_b = params["emb_b"].reshape(1, O)

    x2d = x.reshape(T * B, I)

    # Full unroll only for tiny T; small factor otherwise (loop-carried h/c
    # dependence means more scheduling slack buys nothing).
    unroll = True if T <= 16 else 4

    def kernel(x_ref, wih_ref, whhf_ref, whhb_ref, bias_ref,
               wef_ref, web_ref, be_ref, out_ref,
               xp_ref, hf_ref, hb_ref):
        # ---- prologue: everything hoisted off the serial critical path -----
        #   xp[t*B + b, :4H] = x[t,b] @ Wih_f^T + (bih_f + bhh_f)
        #   xp[t*B + b, 4H:] = x[t,b] @ Wih_b^T + (bih_b + bhh_b)
        xp_ref[...] = (
            jnp.dot(x_ref[...], wih_ref[...], preferred_element_type=jnp.float32)
            + bias_ref[...]
        )
        whh_f = whhf_ref[...]          # (H, 4H)
        whh_b = whhb_ref[...]          # (H, 4H)

        # ---- serial recurrence: one matmul per direction, h stored to VMEM -
        def step(s, carry):
            h_f, c_f, h_b, c_b = carry
            sr = T - 1 - s                       # reversed time for backward dir
            rf = pl.multiple_of(s * B, 8)        # B is a multiple of 8
            rb = pl.multiple_of(sr * B, 8)

            xpf = xp_ref[pl.ds(rf, B), :]        # (B, 8H): forward uses [:, :4H]
            xpb = xp_ref[pl.ds(rb, B), :]        # (B, 8H): backward uses [:, 4H:]

            gates_f = jnp.dot(h_f, whh_f,
                              preferred_element_type=jnp.float32) + xpf[:, :H4]
            gates_b = jnp.dot(h_b, whh_b,
                              preferred_element_type=jnp.float32) + xpb[:, H4:]

            # One full-width sigmoid + one full-width tanh per direction.
            sgf = jax.nn.sigmoid(gates_f)
            thf = jnp.tanh(gates_f)
            sgb = jax.nn.sigmoid(gates_b)
            thb = jnp.tanh(gates_b)

            # PyTorch gate order: i, f, g, o.
            c_f = sgf[:, H:2 * H] * c_f + sgf[:, :H] * thf[:, 2 * H:3 * H]
            h_f = sgf[:, 3 * H:] * jnp.tanh(c_f)
            c_b = sgb[:, H:2 * H] * c_b + sgb[:, :H] * thb[:, 2 * H:3 * H]
            h_b = sgb[:, 3 * H:] * jnp.tanh(c_b)

            # h-history only; the output projection is a batched epilogue.
            hf_ref[pl.ds(rf, B), :] = h_f
            hb_ref[pl.ds(rb, B), :] = h_b
            return h_f, c_f, h_b, c_b

        z = jnp.zeros((B, H), jnp.float32)
        jax.lax.fori_loop(0, T, step, (z, z, z, z), unroll=unroll)

        # ---- epilogue: batched Linear(2H -> O), single contiguous store ----
        out_ref[...] = (
            jnp.dot(hf_ref[...], wef_ref[...], preferred_element_type=jnp.float32)
            + jnp.dot(hb_ref[...], web_ref[...], preferred_element_type=jnp.float32)
            + be_ref[...]
        )

    # ---- VMEM budget sized to the real working set ---------------------------
    def padded_bytes(shape):
        s = list(shape)
        s[-1] = -(-s[-1] // 128) * 128
        if len(s) >= 2:
            s[-2] = -(-s[-2] // 8) * 8
        return math.prod(s) * 4

    io_shapes = [(T * B, I), (I, H8), (H, H4), (H, H4), (1, H8),
                 (H, O), (H, O), (1, O), (T * B, O)]
    scratch_list = [(T * B, H8), (T * B, H), (T * B, H)]
    vmem_needed = (2 * sum(padded_bytes(s) for s in io_shapes)
                   + sum(padded_bytes(s) for s in scratch_list))
    # Clamp to v7x's 64 MiB physical VMEM; floor keeps headroom for spills.
    vmem_limit = min(max(vmem_needed + (4 << 20), 32 << 20), 64 << 20)

    out2d = pl.pallas_call(
        kernel,
        out_shape=jax.ShapeDtypeStruct((T * B, O), jnp.float32),
        in_specs=[
            pl.BlockSpec((T * B, I), lambda: (0, 0)),    # x (flattened)
            pl.BlockSpec((I, H8), lambda: (0, 0)),       # Wih (both dirs) + bias folded later
            pl.BlockSpec((H, H4), lambda: (0, 0)),       # Whh_f^T
            pl.BlockSpec((H, H4), lambda: (0, 0)),       # Whh_b^T
            pl.BlockSpec((1, H8), lambda: (0, 0)),       # combined gate bias
            pl.BlockSpec((H, O), lambda: (0, 0)),        # embedding W (fwd half)
            pl.BlockSpec((H, O), lambda: (0, 0)),        # embedding W (bwd half)
            pl.BlockSpec((1, O), lambda: (0, 0)),        # embedding bias
        ],
        out_specs=pl.BlockSpec((T * B, O), lambda: (0, 0)),
        scratch_shapes=[
            pltpu.VMEM((T * B, H8), jnp.float32),        # hoisted x-projection
            pltpu.VMEM((T * B, H), jnp.float32),         # forward h history
            pltpu.VMEM((T * B, H), jnp.float32),         # backward h history
        ],
        compiler_params=pltpu.CompilerParams(vmem_limit_bytes=vmem_limit),
    )(x2d, wih_cat, whh_f_t, whh_b_t, bias_cat, emb_wf, emb_wb, emb_b)

    return out2d.reshape(T, B, O)[:, :B_in, :]


# ------------------------------ pure-JAX reference ---------------------------
def _lstm_ref(x, wih, whh, bih, bhh, reverse=False):
    T, B, _ = x.shape
    H = whh.shape[1]
    xs = x[::-1] if reverse else x

    def step(carry, xt):
        h, c = carry
        gates = xt @ wih.T + bih + h @ whh.T + bhh
        i, f, g, o = jnp.split(gates, 4, axis=-1)
        i, f, o = jax.nn.sigmoid(i), jax.nn.sigmoid(f), jax.nn.sigmoid(o)
        g = jnp.tanh(g)
        c = f * c + i * g
        h = o * jnp.tanh(c)
        return (h, c), h

    _, hs = jax.lax.scan(step, (jnp.zeros((B, H)), jnp.zeros((B, H))), xs)
    return hs[::-1] if reverse else hs


def _forward_ref(x, p):
    T, B, _ = x.shape
    hf = _lstm_ref(x, p["wih_f"], p["whh_f"], p["bih_f"], p["bhh_f"])
    hb = _lstm_ref(x, p["wih_b"], p["whh_b"], p["bih_b"], p["bhh_b"],
                   reverse=True)
    rec = jnp.concatenate([hf, hb], axis=-1).reshape(T * B, -1)
    out = rec @ p["emb_w"].T + p["emb_b"]
    return out.reshape(T, B, -1)


# ------------------------------------ main -----------------------------------
if __name__ == "__main__":
    # small, module-consistent sizes
    T, B = 8, 2                # seq length, batch
    n_in, n_hidden, n_out = 16, 32, 16

    key = jax.random.PRNGKey(0)
    ks = jax.random.split(key, 11)
    scale = 0.1

    params = {
        # forward direction LSTM weights (PyTorch layout)
        "wih_f": scale * jax.random.normal(ks[0], (4 * n_hidden, n_in), jnp.float32),
        "whh_f": scale * jax.random.normal(ks[1], (4 * n_hidden, n_hidden), jnp.float32),
        "bih_f": scale * jax.random.normal(ks[2], (4 * n_hidden,), jnp.float32),
        "bhh_f": scale * jax.random.normal(ks[3], (4 * n_hidden,), jnp.float32),
        # backward direction
        "wih_b": scale * jax.random.normal(ks[4], (4 * n_hidden, n_in), jnp.float32),
        "whh_b": scale * jax.random.normal(ks[5], (4 * n_hidden, n_hidden), jnp.float32),
        "bih_b": scale * jax.random.normal(ks[6], (4 * n_hidden,), jnp.float32),
        "bhh_b": scale * jax.random.normal(ks[7], (4 * n_hidden,), jnp.float32),
        # embedding Linear(2H -> O)
        "emb_w": scale * jax.random.normal(ks[8], (n_out, 2 * n_hidden), jnp.float32),
        "emb_b": scale * jax.random.normal(ks[9], (n_out,), jnp.float32),
    }

    x = jax.random.normal(ks[10], (T, B, n_in), jnp.float32)

    out = bidirectional_lstm_forward(x, params)
    out = jax.block_until_ready(out)
    assert out.shape == (T, B, n_out), out.shape

    ref = _forward_ref(x, params)
    assert jnp.allclose(out, ref, rtol=1e-3, atol=1e-3), \
        float(jnp.max(jnp.abs(out - ref)))

    print("KERNEL_OK")
</pallas_src>

<mosaic_0001>
module attributes {stable_mosaic.version = 11 : i64} {
  func.func @kernel(%arg0: memref<64x16xf32, #tpu.memory_space<vmem>>, %arg1: memref<16x256xf32, #tpu.memory_space<vmem>>, %arg2: memref<32x128xf32, #tpu.memory_space<vmem>>, %arg3: memref<32x128xf32, #tpu.memory_space<vmem>>, %arg4: memref<1x256xf32, #tpu.memory_space<vmem>>, %arg5: memref<32x16xf32, #tpu.memory_space<vmem>>, %arg6: memref<32x16xf32, #tpu.memory_space<vmem>>, %arg7: memref<1x16xf32, #tpu.memory_space<vmem>>, %arg8: memref<64x16xf32, #tpu.memory_space<vmem>>, %arg9: memref<64x256xf32, #tpu.memory_space<vmem>>, %arg10: memref<64x32xf32, #tpu.memory_space<vmem>>, %arg11: memref<64x32xf32, #tpu.memory_space<vmem>>) attributes {dimension_semantics = [], scalar_prefetch = 0 : i64, scratch_operands = 3 : i64, tpu.core_type = #tpu.core_type<tc>} {
    %c0 = arith.constant 0 : index
    %c0_0 = arith.constant 0 : index
    %0 = vector.load %arg0[%c0, %c0_0] : memref<64x16xf32, #tpu.memory_space<vmem>>, vector<64x16xf32>
    %c0_1 = arith.constant 0 : index
    %c0_2 = arith.constant 0 : index
    %1 = vector.load %arg1[%c0_1, %c0_2] : memref<16x256xf32, #tpu.memory_space<vmem>>, vector<16x256xf32>
    %cst = arith.constant dense<0.000000e+00> : vector<64x256xf32>
    %2 = tpu.matmul %0, %1, %cst {dimension_numbers = #tpu.dot_dimension_numbers<[1], [0], [0], [1], [0, 0, 1, 1], [], []>} : vector<64x16xf32>, vector<16x256xf32>, vector<64x256xf32> -> vector<64x256xf32>
    %c0_3 = arith.constant 0 : index
    %c0_4 = arith.constant 0 : index
    %3 = vector.load %arg4[%c0_3, %c0_4] : memref<1x256xf32, #tpu.memory_space<vmem>>, vector<1x256xf32>
    %4 = vector.broadcast %3 : vector<1x256xf32> to vector<64x256xf32>
    %5 = arith.addf %2, %4 : vector<64x256xf32>
    %c0_5 = arith.constant 0 : index
    %c0_6 = arith.constant 0 : index
    %6 = vector.load %arg9[%c0_5, %c0_6] : memref<64x256xf32, #tpu.memory_space<vmem>>, vector<64x256xf32>
    tpu.vector_store %arg9[%c0_5, %c0_6], %5 {strides = array<i32>} : memref<64x256xf32, #tpu.memory_space<vmem>>, vector<64x256xf32>,
    %c0_7 = arith.constant 0 : index
    %c0_8 = arith.constant 0 : index
    %7 = vector.load %arg2[%c0_7, %c0_8] : memref<32x128xf32, #tpu.memory_space<vmem>>, vector<32x128xf32>
    %c0_9 = arith.constant 0 : index
    %c0_10 = arith.constant 0 : index
    %8 = vector.load %arg3[%c0_9, %c0_10] : memref<32x128xf32, #tpu.memory_space<vmem>>, vector<32x128xf32>
    %cst_11 = arith.constant 0.000000e+00 : f32
    %9 = vector.broadcast %cst_11 : f32 to vector<8x32xf32>
    %c0_i32 = arith.constant 0 : i32
    %c7_i32 = arith.constant 7 : i32
    %10 = arith.subi %c7_i32, %c0_i32 : i32
    %c8_i32 = arith.constant 8 : i32
    %11 = arith.muli %c0_i32, %c8_i32 : i32
    %12 = tpu.assume_multiple %11, 8 : i32
    %c8_i32_12 = arith.constant 8 : i32
    %13 = arith.muli %10, %c8_i32_12 : i32
    %14 = tpu.assume_multiple %13, 8 : i32
    %15 = arith.index_cast %12 : i32 to index
    %c0_13 = arith.constant 0 : index
    %16 = vector.load %arg9[%15, %c0_13] : memref<64x256xf32, #tpu.memory_space<vmem>>, vector<8x256xf32>
    %17 = arith.index_cast %14 : i32 to index
    %c0_14 = arith.constant 0 : index
    %18 = vector.load %arg9[%17, %c0_14] : memref<64x256xf32, #tpu.memory_space<vmem>>, vector<8x256xf32>
    %cst_15 = arith.constant dense<0.000000e+00> : vector<8x128xf32>
    %19 = tpu.matmul %9, %7, %cst_15 {dimension_numbers = #tpu.dot_dimension_numbers<[1], [0], [0], [1], [0, 0, 1, 1], [], []>} : vector<8x32xf32>, vector<32x128xf32>, vector<8x128xf32> -> vector<8x128xf32>
    %20 = vector.extract_strided_slice %16 {offsets = [0, 0], sizes = [8, 128], strides = [1, 1]} : vector<8x256xf32> to vector<8x128xf32>
    %21 = arith.addf %19, %20 : vector<8x128xf32>
    %cst_16 = arith.constant dense<0.000000e+00> : vector<8x128xf32>
    %22 = tpu.matmul %9, %8, %cst_16 {dimension_numbers = #tpu.dot_dimension_numbers<[1], [0], [0], [1], [0, 0, 1, 1], [], []>} : vector<8x32xf32>, vector<32x128xf32>, vector<8x128xf32> -> vector<8x128xf32>
    %23 = vector.extract_strided_slice %18 {offsets = [0, 128], sizes = [8, 128], strides = [1, 1]} : vector<8x256xf32> to vector<8x128xf32>
    %24 = arith.addf %22, %23 : vector<8x128xf32>
    %25 = arith.negf %21 : vector<8x128xf32>
    %26 = math.exp %25 : vector<8x128xf32>
    %cst_17 = arith.constant 1.000000e+00 : f32
    %27 = vector.broadcast %cst_17 : f32 to vector<8x128xf32>
    %28 = arith.addf %27, %26 : vector<8x128xf32>
    %29 = arith.divf %27, %28 : vector<8x128xf32>
    %30 = math.tanh %21 : vector<8x128xf32>
    %31 = arith.negf %24 : vector<8x128xf32>
    %32 = math.exp %31 : vector<8x128xf32>
    %cst_18 = arith.constant 1.000000e+00 : f32
    %33 = vector.broadcast %cst_18 : f32 to vector<8x128xf32>
    %34 = arith.addf %33, %32 : vector<8x128xf32>
    %35 = arith.divf %33, %34 : vector<8x128xf32>
    %36 = math.tanh %24 : vector<8x128xf32>
    %37 = vector.extract_strided_slice %29 {offsets = [0, 32], sizes = [8, 32], strides = [1, 1]} : vector<8x128xf32> to vector<8x32xf32>
    %38 = arith.mulf %37, %9 : vector<8x32xf32>
    %39 = vector.extract_strided_slice %29 {offsets = [0, 0], sizes = [8, 32], strides = [1, 1]} : vector<8x128xf32> to vector<8x32xf32>
    %40 = vector.extract_strided_slice %30 {offsets = [0, 64], sizes = [8, 32], strides = [1, 1]} : vector<8x128xf32> to vector<8x32xf32>
    %41 = arith.mulf %39, %40 : vector<8x32xf32>
    %42 = arith.addf %38, %41 : vector<8x32xf32>
    %43 = vector.extract_strided_slice %29 {offsets = [0, 96], sizes = [8, 32], strides = [1, 1]} : vector<8x128xf32> to vector<8x32xf32>
    %44 = math.tanh %42 : vector<8x32xf32>
    %45 = arith.mulf %43, %44 : vector<8x32xf32>
    %46 = vector.extract_strided_slice %35 {offsets = [0, 32], sizes = [8, 32], strides = [1, 1]} : vector<8x128xf32> to vector<8x32xf32>
    %47 = arith.mulf %46, %9 : vector<8x32xf32>
    %48 = vector.extract_strided_slice %35 {offsets = [0, 0], sizes = [8, 32], strides = [1, 1]} : vector<8x128xf32> to vector<8x32xf32>
    %49 = vector.extract_strided_slice %36 {offsets = [0, 64], sizes = [8, 32], strides = [1, 1]} : vector<8x128xf32> to vector<8x32xf32>
    %50 = arith.mulf %48, %49 : vector<8x32xf32>
    %51 = arith.addf %47, %50 : vector<8x32xf32>
    %52 = vector.extract_strided_slice %35 {offsets = [0, 96], sizes = [8, 32], strides = [1, 1]} : vector<8x128xf32> to vector<8x32xf32>
    %53 = math.tanh %51 : vector<8x32xf32>
    %54 = arith.mulf %52, %53 : vector<8x32xf32>
    %55 = arith.index_cast %12 : i32 to index
    %c0_19 = arith.constant 0 : index
    %56 = vector.load %arg10[%55, %c0_19] : memref<64x32xf32, #tpu.memory_space<vmem>>, vector<8x32xf32>
    tpu.vector_store %arg10[%55, %c0_19], %45 {strides = array<i32>} : memref<64x32xf32, #tpu.memory_space<vmem>>, vector<8x32xf32>,
    %57 = arith.index_cast %14 : i32 to index
    %c0_20 = arith.constant 0 : index
    %58 = vector.load %arg11[%57, %c0_20] : memref<64x32xf32, #tpu.memory_space<vmem>>, vector<8x32xf32>
    tpu.vector_store %arg11[%57, %c0_20], %54 {strides = array<i32>} : memref<64x32xf32, #tpu.memory_space<vmem>>, vector<8x32xf32>,
    %c1_i32 = arith.constant 1 : i32
    %c7_i32_21 = arith.constant 7 : i32
    %59 = arith.subi %c7_i32_21, %c1_i32 : i32
    %c8_i32_22 = arith.constant 8 : i32
    %60 = arith.muli %c1_i32, %c8_i32_22 : i32
    %61 = tpu.assume_multiple %60, 8 : i32
    %c8_i32_23 = arith.constant 8 : i32
    %62 = arith.muli %59, %c8_i32_23 : i32
    %63 = tpu.assume_multiple %62, 8 : i32
    %64 = arith.index_cast %61 : i32 to index
    %c0_24 = arith.constant 0 : index
    %65 = vector.load %arg9[%64, %c0_24] : memref<64x256xf32, #tpu.memory_space<vmem>>, vector<8x256xf32>
    %66 = arith.index_cast %63 : i32 to index
    %c0_25 = arith.constant 0 : index
    %67 = vector.load %arg9[%66, %c0_25] : memref<64x256xf32, #tpu.memory_space<vmem>>, vector<8x256xf32>
    %cst_26 = arith.constant dense<0.000000e+00> : vector<8x128xf32>
    %68 = tpu.matmul %45, %7, %cst_26 {dimension_numbers = #tpu.dot_dimension_numbers<[1], [0], [0], [1], [0, 0, 1, 1], [], []>} : vector<8x32xf32>, vector<32x128xf32>, vector<8x128xf32> -> vector<8x128xf32>
    %69 = vector.extract_strided_slice %65 {offsets = [0, 0], sizes = [8, 128], strides = [1, 1]} : vector<8x256xf32> to vector<8x128xf32>
    %70 = arith.addf %68, %69 : vector<8x128xf32>
    %cst_27 = arith.constant dense<0.000000e+00> : vector<8x128xf32>
    %71 = tpu.matmul %54, %8, %cst_27 {dimension_numbers = #tpu.dot_dimension_numbers<[1], [0], [0], [1], [0, 0, 1, 1], [], []>} : vector<8x32xf32>, vector<32x128xf32>, vector<8x128xf32> -> vector<8x128xf32>
    %72 = vector.extract_strided_slice %67 {offsets = [0, 128], sizes = [8, 128], strides = [1, 1]} : vector<8x256xf32> to vector<8x128xf32>
    %73 = arith.addf %71, %72 : vector<8x128xf32>
    %74 = arith.negf %70 : vector<8x128xf32>
    %75 = math.exp %74 : vector<8x128xf32>
    %cst_28 = arith.constant 1.000000e+00 : f32
    %76 = vector.broadcast %cst_28 : f32 to vector<8x128xf32>
    %77 = arith.addf %76, %75 : vector<8x128xf32>
    %78 = arith.divf %76, %77 : vector<8x128xf32>
    %79 = math.tanh %70 : vector<8x128xf32>
    %80 = arith.negf %73 : vector<8x128xf32>
    %81 = math.exp %80 : vector<8x128xf32>
    %cst_29 = arith.constant 1.000000e+00 : f32
    %82 = vector.broadcast %cst_29 : f32 to vector<8x128xf32>
    %83 = arith.addf %82, %81 : vector<8x128xf32>
    %84 = arith.divf %82, %83 : vector<8x128xf32>
    %85 = math.tanh %73 : vector<8x128xf32>
    %86 = vector.extract_strided_slice %78 {offsets = [0, 32], sizes = [8, 32], strides = [1, 1]} : vector<8x128xf32> to vector<8x32xf32>
    %87 = arith.mulf %86, %42 : vector<8x32xf32>
    %88 = vector.extract_strided_slice %78 {offsets = [0, 0], sizes = [8, 32], strides = [1, 1]} : vector<8x128xf32> to vector<8x32xf32>
    %89 = vector.extract_strided_slice %79 {offsets = [0, 64], sizes = [8, 32], strides = [1, 1]} : vector<8x128xf32> to vector<8x32xf32>
    %90 = arith.mulf %88, %89 : vector<8x32xf32>
    %91 = arith.addf %87, %90 : vector<8x32xf32>
    %92 = vector.extract_strided_slice %78 {offsets = [0, 96], sizes = [8, 32], strides = [1, 1]} : vector<8x128xf32> to vector<8x32xf32>
    %93 = math.tanh %91 : vector<8x32xf32>
    %94 = arith.mulf %92, %93 : vector<8x32xf32>
    %95 = vector.extract_strided_slice %84 {offsets = [0, 32], sizes = [8, 32], strides = [1, 1]} : vector<8x128xf32> to vector<8x32xf32>
    %96 = arith.mulf %95, %51 : vector<8x32xf32>
    %97 = vector.extract_strided_slice %84 {offsets = [0, 0], sizes = [8, 32], strides = [1, 1]} : vector<8x128xf32> to vector<8x32xf32>
    %98 = vector.extract_strided_slice %85 {offsets = [0, 64], sizes = [8, 32], strides = [1, 1]} : vector<8x128xf32> to vector<8x32xf32>
    %99 = arith.mulf %97, %98 : vector<8x32xf32>
    %100 = arith.addf %96, %99 : vector<8x32xf32>
    %101 = vector.extract_strided_slice %84 {offsets = [0, 96], sizes = [8, 32], strides = [1, 1]} : vector<8x128xf32> to vector<8x32xf32>
    %102 = math.tanh %100 : vector<8x32xf32>
    %103 = arith.mulf %101, %102 : vector<8x32xf32>
    %104 = arith.index_cast %61 : i32 to index
    %c0_30 = arith.constant 0 : index
    %105 = vector.load %arg10[%104, %c0_30] : memref<64x32xf32, #tpu.memory_space<vmem>>, vector<8x32xf32>
    tpu.vector_store %arg10[%104, %c0_30], %94 {strides = array<i32>} : memref<64x32xf32, #tpu.memory_space<vmem>>, vector<8x32xf32>,
    %106 = arith.index_cast %63 : i32 to index
    %c0_31 = arith.constant 0 : index
    %107 = vector.load %arg11[%106, %c0_31] : memref<64x32xf32, #tpu.memory_space<vmem>>, vector<8x32xf32>
    tpu.vector_store %arg11[%106, %c0_31], %103 {strides = array<i32>} : memref<64x32xf32, #tpu.memory_space<vmem>>, vector<8x32xf32>,
    %c2_i32 = arith.constant 2 : i32
    %c7_i32_32 = arith.constant 7 : i32
    %108 = arith.subi %c7_i32_32, %c2_i32 : i32
    %c8_i32_33 = arith.constant 8 : i32
    %109 = arith.muli %c2_i32, %c8_i32_33 : i32
    %110 = tpu.assume_multiple %109, 8 : i32
    %c8_i32_34 = arith.constant 8 : i32
    %111 = arith.muli %108, %c8_i32_34 : i32
    %112 = tpu.assume_multiple %111, 8 : i32
    %113 = arith.index_cast %110 : i32 to index
    %c0_35 = arith.constant 0 : index
    %114 = vector.load %arg9[%113, %c0_35] : memref<64x256xf32, #tpu.memory_space<vmem>>, vector<8x256xf32>
    %115 = arith.index_cast %112 : i32 to index
    %c0_36 = arith.constant 0 : index
    %116 = vector.load %arg9[%115, %c0_36] : memref<64x256xf32, #tpu.memory_space<vmem>>, vector<8x256xf32>
    %cst_37 = arith.constant dense<0.000000e+00> : vector<8x128xf32>
    %117 = tpu.matmul %94, %7, %cst_37 {dimension_numbers = #tpu.dot_dimension_numbers<[1], [0], [0], [1], [0, 0, 1, 1], [], []>} : vector<8x32xf32>, vector<32x128xf32>, vector<8x128xf32> -> vector<8x128xf32>
    %118 = vector.extract_strided_slice %114 {offsets = [0, 0], sizes = [8, 128], strides = [1, 1]} : vector<8x256xf32> to vector<8x128xf32>
    %119 = arith.addf %117, %118 : vector<8x128xf32>
    %cst_38 = arith.constant dense<0.000000e+00> : vector<8x128xf32>
    %120 = tpu.matmul %103, %8, %cst_38 {dimension_numbers = #tpu.dot_dimension_numbers<[1], [0], [0], [1], [0, 0, 1, 1], [], []>} : vector<8x32xf32>, vector<32x128xf32>, vector<8x128xf32> -> vector<8x128xf32>
    %121 = vector.extract_strided_slice %116 {offsets = [0, 128], sizes = [8, 128], strides = [1, 1]} : vector<8x256xf32> to vector<8x128xf32>
    %122 = arith.addf %120, %121 : vector<8x128xf32>
    %123 = arith.negf %119 : vector<8x128xf32>
    %124 = math.exp %123 : vector<8x128xf32>
    %cst_39 = arith.constant 1.000000e+00 : f32
    %125 = vector.broadcast %cst_39 : f32 to vector<8x128xf32>
    %126 = arith.addf %125, %124 : vector<8x128xf32>
    %127 = arith.divf %125, %126 : vector<8x128xf32>
    %128 = math.tanh %119 : vector<8x128xf32>
    %129 = arith.negf %122 : vector<8x128xf32>
    %130 = math.exp %129 : vector<8x128xf32>
    %cst_40 = arith.constant 1.000000e+00 : f32
    %131 = vector.broadcast %cst_40 : f32 to vector<8x128xf32>
    %132 = arith.addf %131, %130 : vector<8x128xf32>
    %133 = arith.divf %131, %132 : vector<8x128xf32>
    %134 = math.tanh %122 : vector<8x128xf32>
    %135 = vector.extract_strided_slice %127 {offsets = [0, 32], sizes = [8, 32], strides = [1, 1]} : vector<8x128xf32> to vector<8x32xf32>
    %136 = arith.mulf %135, %91 : vector<8x32xf32>
    %137 = vector.extract_strided_slice %127 {offsets = [0, 0], sizes = [8, 32], strides = [1, 1]} : vector<8x128xf32> to vector<8x32xf32>
    %138 = vector.extract_strided_slice %128 {offsets = [0, 64], sizes = [8, 32], strides = [1, 1]} : vector<8x128xf32> to vector<8x32xf32>
    %139 = arith.mulf %137, %138 : vector<8x32xf32>
    %140 = arith.addf %136, %139 : vector<8x32xf32>
    %141 = vector.extract_strided_slice %127 {offsets = [0, 96], sizes = [8, 32], strides = [1, 1]} : vector<8x128xf32> to vector<8x32xf32>
    %142 = math.tanh %140 : vector<8x32xf32>
    %143 = arith.mulf %141, %142 : vector<8x32xf32>
    %144 = vector.extract_strided_slice %133 {offsets = [0, 32], sizes = [8, 32], strides = [1, 1]} : vector<8x128xf32> to vector<8x32xf32>
    %145 = arith.mulf %144, %100 : vector<8x32xf32>
    %146 = vector.extract_strided_slice %133 {offsets = [0, 0], sizes = [8, 32], strides = [1, 1]} : vector<8x128xf32> to vector<8x32xf32>
    %147 = vector.extract_strided_slice %134 {offsets = [0, 64], sizes = [8, 32], strides = [1, 1]} : vector<8x128xf32> to vector<8x32xf32>
    %148 = arith.mulf %146, %147 : vector<8x32xf32>
    %149 = arith.addf %145, %148 : vector<8x32xf32>
    %150 = vector.extract_strided_slice %133 {offsets = [0, 96], sizes = [8, 32], strides = [1, 1]} : vector<8x128xf32> to vector<8x32xf32>
    %151 = math.tanh %149 : vector<8x32xf32>
    %152 = arith.mulf %150, %151 : vector<8x32xf32>
    %153 = arith.index_cast %110 : i32 to index
    %c0_41 = arith.constant 0 : index
    %154 = vector.load %arg10[%153, %c0_41] : memref<64x32xf32, #tpu.memory_space<vmem>>, vector<8x32xf32>
    tpu.vector_store %arg10[%153, %c0_41], %143 {strides = array<i32>} : memref<64x32xf32, #tpu.memory_space<vmem>>, vector<8x32xf32>,
    %155 = arith.index_cast %112 : i32 to index
    %c0_42 = arith.constant 0 : index
    %156 = vector.load %arg11[%155, %c0_42] : memref<64x32xf32, #tpu.memory_space<vmem>>, vector<8x32xf32>
    tpu.vector_store %arg11[%155, %c0_42], %152 {strides = array<i32>} : memref<64x32xf32, #tpu.memory_space<vmem>>, vector<8x32xf32>,
    %c3_i32 = arith.constant 3 : i32
    %c7_i32_43 = arith.constant 7 : i32
    %157 = arith.subi %c7_i32_43, %c3_i32 : i32
    %c8_i32_44 = arith.constant 8 : i32
    %158 = arith.muli %c3_i32, %c8_i32_44 : i32
    %159 = tpu.assume_multiple %158, 8 : i32
    %c8_i32_45 = arith.constant 8 : i32
    %160 = arith.muli %157, %c8_i32_45 : i32
    %161 = tpu.assume_multiple %160, 8 : i32
    %162 = arith.index_cast %159 : i32 to index
    %c0_46 = arith.constant 0 : index
    %163 = vector.load %arg9[%162, %c0_46] : memref<64x256xf32, #tpu.memory_space<vmem>>, vector<8x256xf32>
    %164 = arith.index_cast %161 : i32 to index
    %c0_47 = arith.constant 0 : index
    %165 = vector.load %arg9[%164, %c0_47] : memref<64x256xf32, #tpu.memory_space<vmem>>, vector<8x256xf32>
    %cst_48 = arith.constant dense<0.000000e+00> : vector<8x128xf32>
    %166 = tpu.matmul %143, %7, %cst_48 {dimension_numbers = #tpu.dot_dimension_numbers<[1], [0], [0], [1], [0, 0, 1, 1], [], []>} : vector<8x32xf32>, vector<32x128xf32>, vector<8x128xf32> -> vector<8x128xf32>
    %167 = vector.extract_strided_slice %163 {offsets = [0, 0], sizes = [8, 128], strides = [1, 1]} : vector<8x256xf32> to vector<8x128xf32>
    %168 = arith.addf %166, %167 : vector<8x128xf32>
    %cst_49 = arith.constant dense<0.000000e+00> : vector<8x128xf32>
    %169 = tpu.matmul %152, %8, %cst_49 {dimension_numbers = #tpu.dot_dimension_numbers<[1], [0], [0], [1], [0, 0, 1, 1], [], []>} : vector<8x32xf32>, vector<32x128xf32>, vector<8x128xf32> -> vector<8x128xf32>
    %170 = vector.extract_strided_slice %165 {offsets = [0, 128], sizes = [8, 128], strides = [1, 1]} : vector<8x256xf32> to vector<8x128xf32>
    %171 = arith.addf %169, %170 : vector<8x128xf32>
    %172 = arith.negf %168 : vector<8x128xf32>
    %173 = math.exp %172 : vector<8x128xf32>
    %cst_50 = arith.constant 1.000000e+00 : f32
    %174 = vector.broadcast %cst_50 : f32 to vector<8x128xf32>
    %175 = arith.addf %174, %173 : vector<8x128xf32>
    %176 = arith.divf %174, %175 : vector<8x128xf32>
    %177 = math.tanh %168 : vector<8x128xf32>
    %178 = arith.negf %171 : vector<8x128xf32>
    %179 = math.exp %178 : vector<8x128xf32>
    %cst_51 = arith.constant 1.000000e+00 : f32
    %180 = vector.broadcast %cst_51 : f32 to vector<8x128xf32>
    %181 = arith.addf %180, %179 : vector<8x128xf32>
    %182 = arith.divf %180, %181 : vector<8x128xf32>
    %183 = math.tanh %171 : vector<8x128xf32>
    %184 = vector.extract_strided_slice %176 {offsets = [0, 32], sizes = [8, 32], strides = [1, 1]} : vector<8x128xf32> to vector<8x32xf32>
    %185 = arith.mulf %184, %140 : vector<8x32xf32>
    %186 = vector.extract_strided_slice %176 {offsets = [0, 0], sizes = [8, 32], strides = [1, 1]} : vector<8x128xf32> to vector<8x32xf32>
    %187 = vector.extract_strided_slice %177 {offsets = [0, 64], sizes = [8, 32], strides = [1, 1]} : vector<8x128xf32> to vector<8x32xf32>
    %188 = arith.mulf %186, %187 : vector<8x32xf32>
    %189 = arith.addf %185, %188 : vector<8x32xf32>
    %190 = vector.extract_strided_slice %176 {offsets = [0, 96], sizes = [8, 32], strides = [1, 1]} : vector<8x128xf32> to vector<8x32xf32>
    %191 = math.tanh %189 : vector<8x32xf32>
    %192 = arith.mulf %190, %191 : vector<8x32xf32>
    %193 = vector.extract_strided_slice %182 {offsets = [0, 32], sizes = [8, 32], strides = [1, 1]} : vector<8x128xf32> to vector<8x32xf32>
    %194 = arith.mulf %193, %149 : vector<8x32xf32>
    %195 = vector.extract_strided_slice %182 {offsets = [0, 0], sizes = [8, 32], strides = [1, 1]} : vector<8x128xf32> to vector<8x32xf32>
    %196 = vector.extract_strided_slice %183 {offsets = [0, 64], sizes = [8, 32], strides = [1, 1]} : vector<8x128xf32> to vector<8x32xf32>
    %197 = arith.mulf %195, %196 : vector<8x32xf32>
    %198 = arith.addf %194, %197 : vector<8x32xf32>
    %199 = vector.extract_strided_slice %182 {offsets = [0, 96], sizes = [8, 32], strides = [1, 1]} : vector<8x128xf32> to vector<8x32xf32>
    %200 = math.tanh %198 : vector<8x32xf32>
    %201 = arith.mulf %199, %200 : vector<8x32xf32>
    %202 = arith.index_cast %159 : i32 to index
    %c0_52 = arith.constant 0 : index
    %203 = vector.load %arg10[%202, %c0_52] : memref<64x32xf32, #tpu.memory_space<vmem>>, vector<8x32xf32>
    tpu.vector_store %arg10[%202, %c0_52], %192 {strides = array<i32>} : memref<64x32xf32, #tpu.memory_space<vmem>>, vector<8x32xf32>,
    %204 = arith.index_cast %161 : i32 to index
    %c0_53 = arith.constant 0 : index
    %205 = vector.load %arg11[%204, %c0_53] : memref<64x32xf32, #tpu.memory_space<vmem>>, vector<8x32xf32>
    tpu.vector_store %arg11[%204, %c0_53], %201 {strides = array<i32>} : memref<64x32xf32, #tpu.memory_space<vmem>>, vector<8x32xf32>,
    %c4_i32 = arith.constant 4 : i32
    %c7_i32_54 = arith.constant 7 : i32
    %206 = arith.subi %c7_i32_54, %c4_i32 : i32
    %c8_i32_55 = arith.constant 8 : i32
    %207 = arith.muli %c4_i32, %c8_i32_55 : i32
    %208 = tpu.assume_multiple %207, 8 : i32
    %c8_i32_56 = arith.constant 8 : i32
    %209 = arith.muli %206, %c8_i32_56 : i32
    %210 = tpu.assume_multiple %209, 8 : i32
    %211 = arith.index_cast %208 : i32 to index
    %c0_57 = arith.constant 0 : index
    %212 = vector.load %arg9[%211, %c0_57] : memref<64x256xf32, #tpu.memory_space<vmem>>, vector<8x256xf32>
    %213 = arith.index_cast %210 : i32 to index
    %c0_58 = arith.constant 0 : index
    %214 = vector.load %arg9[%213, %c0_58] : memref<64x256xf32, #tpu.memory_space<vmem>>, vector<8x256xf32>
    %cst_59 = arith.constant dense<0.000000e+00> : vector<8x128xf32>
    %215 = tpu.matmul %192, %7, %cst_59 {dimension_numbers = #tpu.dot_dimension_numbers<[1], [0], [0], [1], [0, 0, 1, 1], [], []>} : vector<8x32xf32>, vector<32x128xf32>, vector<8x128xf32> -> vector<8x128xf32>
    %216 = vector.extract_strided_slice %212 {offsets = [0, 0], sizes = [8, 128], strides = [1, 1]} : vector<8x256xf32> to vector<8x128xf32>
    %217 = arith.addf %215, %216 : vector<8x128xf32>
    %cst_60 = arith.constant dense<0.000000e+00> : vector<8x128xf32>
    %218 = tpu.matmul %201, %8, %cst_60 {dimension_numbers = #tpu.dot_dimension_numbers<[1], [0], [0], [1], [0, 0, 1, 1], [], []>} : vector<8x32xf32>, vector<32x128xf32>, vector<8x128xf32> -> vector<8x128xf32>
    %219 = vector.extract_strided_slice %214 {offsets = [0, 128], sizes = [8, 128], strides = [1, 1]} : vector<8x256xf32> to vector<8x128xf32>
    %220 = arith.addf %218, %219 : vector<8x128xf32>
    %221 = arith.negf %217 : vector<8x128xf32>
    %222 = math.exp %221 : vector<8x128xf32>
    %cst_61 = arith.constant 1.000000e+00 : f32
    %223 = vector.broadcast %cst_61 : f32 to vector<8x128xf32>
    %224 = arith.addf %223, %222 : vector<8x128xf32>
    %225 = arith.divf %223, %224 : vector<8x128xf32>
    %226 = math.tanh %217 : vector<8x128xf32>
    %227 = arith.negf %220 : vector<8x128xf32>
    %228 = math.exp %227 : vector<8x128xf32>
    %cst_62 = arith.constant 1.000000e+00 : f32
    %229 = vector.broadcast %cst_62 : f32 to vector<8x128xf32>
    %230 = arith.addf %229, %228 : vector<8x128xf32>
    %231 = arith.divf %229, %230 : vector<8x128xf32>
    %232 = math.tanh %220 : vector<8x128xf32>
    %233 = vector.extract_strided_slice %225 {offsets = [0, 32], sizes = [8, 32], strides = [1, 1]} : vector<8x128xf32> to vector<8x32xf32>
    %234 = arith.mulf %233, %189 : vector<8x32xf32>
    %235 = vector.extract_strided_slice %225 {offsets = [0, 0], sizes = [8, 32], strides = [1, 1]} : vector<8x128xf32> to vector<8x32xf32>
    %236 = vector.extract_strided_slice %226 {offsets = [0, 64], sizes = [8, 32], strides = [1, 1]} : vector<8x128xf32> to vector<8x32xf32>
    %237 = arith.mulf %235, %236 : vector<8x32xf32>
    %238 = arith.addf %234, %237 : vector<8x32xf32>
    %239 = vector.extract_strided_slice %225 {offsets = [0, 96], sizes = [8, 32], strides = [1, 1]} : vector<8x128xf32> to vector<8x32xf32>
    %240 = math.tanh %238 : vector<8x32xf32>
    %241 = arith.mulf %239, %240 : vector<8x32xf32>
    %242 = vector.extract_strided_slice %231 {offsets = [0, 32], sizes = [8, 32], strides = [1, 1]} : vector<8x128xf32> to vector<8x32xf32>
    %243 = arith.mulf %242, %198 : vector<8x32xf32>
    %244 = vector.extract_strided_slice %231 {offsets = [0, 0], sizes = [8, 32], strides = [1, 1]} : vector<8x128xf32> to vector<8x32xf32>
    %245 = vector.extract_strided_slice %232 {offsets = [0, 64], sizes = [8, 32], strides = [1, 1]} : vector<8x128xf32> to vector<8x32xf32>
    %246 = arith.mulf %244, %245 : vector<8x32xf32>
    %247 = arith.addf %243, %246 : vector<8x32xf32>
    %248 = vector.extract_strided_slice %231 {offsets = [0, 96], sizes = [8, 32], strides = [1, 1]} : vector<8x128xf32> to vector<8x32xf32>
    %249 = math.tanh %247 : vector<8x32xf32>
    %250 = arith.mulf %248, %249 : vector<8x32xf32>
    %251 = arith.index_cast %208 : i32 to index
    %c0_63 = arith.constant 0 : index
    %252 = vector.load %arg10[%251, %c0_63] : memref<64x32xf32, #tpu.memory_space<vmem>>, vector<8x32xf32>
    tpu.vector_store %arg10[%251, %c0_63], %241 {strides = array<i32>} : memref<64x32xf32, #tpu.memory_space<vmem>>, vector<8x32xf32>,
    %253 = arith.index_cast %210 : i32 to index
    %c0_64 = arith.constant 0 : index
    %254 = vector.load %arg11[%253, %c0_64] : memref<64x32xf32, #tpu.memory_space<vmem>>, vector<8x32xf32>
    tpu.vector_store %arg11[%253, %c0_64], %250 {strides = array<i32>} : memref<64x32xf32, #tpu.memory_space<vmem>>, vector<8x32xf32>,
    %c5_i32 = arith.constant 5 : i32
    %c7_i32_65 = arith.constant 7 : i32
    %255 = arith.subi %c7_i32_65, %c5_i32 : i32
    %c8_i32_66 = arith.constant 8 : i32
    %256 = arith.muli %c5_i32, %c8_i32_66 : i32
    %257 = tpu.assume_multiple %256, 8 : i32
    %c8_i32_67 = arith.constant 8 : i32
    %258 = arith.muli %255, %c8_i32_67 : i32
    %259 = tpu.assume_multiple %258, 8 : i32
    %260 = arith.index_cast %257 : i32 to index
    %c0_68 = arith.constant 0 : index
    %261 = vector.load %arg9[%260, %c0_68] : memref<64x256xf32, #tpu.memory_space<vmem>>, vector<8x256xf32>
    %262 = arith.index_cast %259 : i32 to index
    %c0_69 = arith.constant 0 : index
    %263 = vector.load %arg9[%262, %c0_69] : memref<64x256xf32, #tpu.memory_space<vmem>>, vector<8x256xf32>
    %cst_70 = arith.constant dense<0.000000e+00> : vector<8x128xf32>
    %264 = tpu.matmul %241, %7, %cst_70 {dimension_numbers = #tpu.dot_dimension_numbers<[1], [0], [0], [1], [0, 0, 1, 1], [], []>} : vector<8x32xf32>, vector<32x128xf32>, vector<8x128xf32> -> vector<8x128xf32>
    %265 = vector.extract_strided_slice %261 {offsets = [0, 0], sizes = [8, 128], strides = [1, 1]} : vector<8x256xf32> to vector<8x128xf32>
    %266 = arith.addf %264, %265 : vector<8x128xf32>
    %cst_71 = arith.constant dense<0.000000e+00> : vector<8x128xf32>
    %267 = tpu.matmul %250, %8, %cst_71 {dimension_numbers = #tpu.dot_dimension_numbers<[1], [0], [0], [1], [0, 0, 1, 1], [], []>} : vector<8x32xf32>, vector<32x128xf32>, vector<8x128xf32> -> vector<8x128xf32>
    %268 = vector.extract_strided_slice %263 {offsets = [0, 128], sizes = [8, 128], strides = [1, 1]} : vector<8x256xf32> to vector<8x128xf32>
    %269 = arith.addf %267, %268 : vector<8x128xf32>
    %270 = arith.negf %266 : vector<8x128xf32>
    %271 = math.exp %270 : vector<8x128xf32>
    %cst_72 = arith.constant 1.000000e+00 : f32
    %272 = vector.broadcast %cst_72 : f32 to vector<8x128xf32>
    %273 = arith.addf %272, %271 : vector<8x128xf32>
    %274 = arith.divf %272, %273 : vector<8x128xf32>
    %275 = math.tanh %266 : vector<8x128xf32>
    %276 = arith.negf %269 : vector<8x128xf32>
    %277 = math.exp %276 : vector<8x128xf32>
    %cst_73 = arith.constant 1.000000e+00 : f32
    %278 = vector.broadcast %cst_73 : f32 to vector<8x128xf32>
    %279 = arith.addf %278, %277 : vector<8x128xf32>
    %280 = arith.divf %278, %279 : vector<8x128xf32>
    %281 = math.tanh %269 : vector<8x128xf32>
    %282 = vector.extract_strided_slice %274 {offsets = [0, 32], sizes = [8, 32], strides = [1, 1]} : vector<8x128xf32> to vector<8x32xf32>
    %283 = arith.mulf %282, %238 : vector<8x32xf32>
    %284 = vector.extract_strided_slice %274 {offsets = [0, 0], sizes = [8, 32], strides = [1, 1]} : vector<8x128xf32> to vector<8x32xf32>
    %285 = vector.extract_strided_slice %275 {offsets = [0, 64], sizes = [8, 32], strides = [1, 1]} : vector<8x128xf32> to vector<8x32xf32>
    %286 = arith.mulf %284, %285 : vector<8x32xf32>
    %287 = arith.addf %283, %286 : vector<8x32xf32>
    %288 = vector.extract_strided_slice %274 {offsets = [0, 96], sizes = [8, 32], strides = [1, 1]} : vector<8x128xf32> to vector<8x32xf32>
    %289 = math.tanh %287 : vector<8x32xf32>
    %290 = arith.mulf %288, %289 : vector<8x32xf32>
    %291 = vector.extract_strided_slice %280 {offsets = [0, 32], sizes = [8, 32], strides = [1, 1]} : vector<8x128xf32> to vector<8x32xf32>
    %292 = arith.mulf %291, %247 : vector<8x32xf32>
    %293 = vector.extract_strided_slice %280 {offsets = [0, 0], sizes = [8, 32], strides = [1, 1]} : vector<8x128xf32> to vector<8x32xf32>
    %294 = vector.extract_strided_slice %281 {offsets = [0, 64], sizes = [8, 32], strides = [1, 1]} : vector<8x128xf32> to vector<8x32xf32>
    %295 = arith.mulf %293, %294 : vector<8x32xf32>
    %296 = arith.addf %292, %295 : vector<8x32xf32>
    %297 = vector.extract_strided_slice %280 {offsets = [0, 96], sizes = [8, 32], strides = [1, 1]} : vector<8x128xf32> to vector<8x32xf32>
    %298 = math.tanh %296 : vector<8x32xf32>
    %299 = arith.mulf %297, %298 : vector<8x32xf32>
    %300 = arith.index_cast %257 : i32 to index
    %c0_74 = arith.constant 0 : index
    %301 = vector.load %arg10[%300, %c0_74] : memref<64x32xf32, #tpu.memory_space<vmem>>, vector<8x32xf32>
    tpu.vector_store %arg10[%300, %c0_74], %290 {strides = array<i32>} : memref<64x32xf32, #tpu.memory_space<vmem>>, vector<8x32xf32>,
    %302 = arith.index_cast %259 : i32 to index
    %c0_75 = arith.constant 0 : index
    %303 = vector.load %arg11[%302, %c0_75] : memref<64x32xf32, #tpu.memory_space<vmem>>, vector<8x32xf32>
    tpu.vector_store %arg11[%302, %c0_75], %299 {strides = array<i32>} : memref<64x32xf32, #tpu.memory_space<vmem>>, vector<8x32xf32>,
    %c6_i32 = arith.constant 6 : i32
    %c7_i32_76 = arith.constant 7 : i32
    %304 = arith.subi %c7_i32_76, %c6_i32 : i32
    %c8_i32_77 = arith.constant 8 : i32
    %305 = arith.muli %c6_i32, %c8_i32_77 : i32
    %306 = tpu.assume_multiple %305, 8 : i32
    %c8_i32_78 = arith.constant 8 : i32
    %307 = arith.muli %304, %c8_i32_78 : i32
    %308 = tpu.assume_multiple %307, 8 : i32
    %309 = arith.index_cast %306 : i32 to index
    %c0_79 = arith.constant 0 : index
    %310 = vector.load %arg9[%309, %c0_79] : memref<64x256xf32, #tpu.memory_space<vmem>>, vector<8x256xf32>
    %311 = arith.index_cast %308 : i32 to index
    %c0_80 = arith.constant 0 : index
    %312 = vector.load %arg9[%311, %c0_80] : memref<64x256xf32, #tpu.memory_space<vmem>>, vector<8x256xf32>
    %cst_81 = arith.constant dense<0.000000e+00> : vector<8x128xf32>
    %313 = tpu.matmul %290, %7, %cst_81 {dimension_numbers = #tpu.dot_dimension_numbers<[1], [0], [0], [1], [0, 0, 1, 1], [], []>} : vector<8x32xf32>, vector<32x128xf32>, vector<8x128xf32> -> vector<8x128xf32>
    %314 = vector.extract_strided_slice %310 {offsets = [0, 0], sizes = [8, 128], strides = [1, 1]} : vector<8x256xf32> to vector<8x128xf32>
    %315 = arith.addf %313, %314 : vector<8x128xf32>
    %cst_82 = arith.constant dense<0.000000e+00> : vector<8x128xf32>
    %316 = tpu.matmul %299, %8, %cst_82 {dimension_numbers = #tpu.dot_dimension_numbers<[1], [0], [0], [1], [0, 0, 1, 1], [], []>} : vector<8x32xf32>, vector<32x128xf32>, vector<8x128xf32> -> vector<8x128xf32>
    %317 = vector.extract_strided_slice %312 {offsets = [0, 128], sizes = [8, 128], strides = [1, 1]} : vector<8x256xf32> to vector<8x128xf32>
    %318 = arith.addf %316, %317 : vector<8x128xf32>
    %319 = arith.negf %315 : vector<8x128xf32>
    %320 = math.exp %319 : vector<8x128xf32>
    %cst_83 = arith.constant 1.000000e+00 : f32
    %321 = vector.broadcast %cst_83 : f32 to vector<8x128xf32>
    %322 = arith.addf %321, %320 : vector<8x128xf32>
    %323 = arith.divf %321, %322 : vector<8x128xf32>
    %324 = math.tanh %315 : vector<8x128xf32>
    %325 = arith.negf %318 : vector<8x128xf32>
    %326 = math.exp %325 : vector<8x128xf32>
    %cst_84 = arith.constant 1.000000e+00 : f32
    %327 = vector.broadcast %cst_84 : f32 to vector<8x128xf32>
    %328 = arith.addf %327, %326 : vector<8x128xf32>
    %329 = arith.divf %327, %328 : vector<8x128xf32>
    %330 = math.tanh %318 : vector<8x128xf32>
    %331 = vector.extract_strided_slice %323 {offsets = [0, 32], sizes = [8, 32], strides = [1, 1]} : vector<8x128xf32> to vector<8x32xf32>
    %332 = arith.mulf %331, %287 : vector<8x32xf32>
    %333 = vector.extract_strided_slice %323 {offsets = [0, 0], sizes = [8, 32], strides = [1, 1]} : vector<8x128xf32> to vector<8x32xf32>
    %334 = vector.extract_strided_slice %324 {offsets = [0, 64], sizes = [8, 32], strides = [1, 1]} : vector<8x128xf32> to vector<8x32xf32>
    %335 = arith.mulf %333, %334 : vector<8x32xf32>
    %336 = arith.addf %332, %335 : vector<8x32xf32>
    %337 = vector.extract_strided_slice %323 {offsets = [0, 96], sizes = [8, 32], strides = [1, 1]} : vector<8x128xf32> to vector<8x32xf32>
    %338 = math.tanh %336 : vector<8x32xf32>
    %339 = arith.mulf %337, %338 : vector<8x32xf32>
    %340 = vector.extract_strided_slice %329 {offsets = [0, 32], sizes = [8, 32], strides = [1, 1]} : vector<8x128xf32> to vector<8x32xf32>
    %341 = arith.mulf %340, %296 : vector<8x32xf32>
    %342 = vector.extract_strided_slice %329 {offsets = [0, 0], sizes = [8, 32], strides = [1, 1]} : vector<8x128xf32> to vector<8x32xf32>
    %343 = vector.extract_strided_slice %330 {offsets = [0, 64], sizes = [8, 32], strides = [1, 1]} : vector<8x128xf32> to vector<8x32xf32>
    %344 = arith.mulf %342, %343 : vector<8x32xf32>
    %345 = arith.addf %341, %344 : vector<8x32xf32>
    %346 = vector.extract_strided_slice %329 {offsets = [0, 96], sizes = [8, 32], strides = [1, 1]} : vector<8x128xf32> to vector<8x32xf32>
    %347 = math.tanh %345 : vector<8x32xf32>
    %348 = arith.mulf %346, %347 : vector<8x32xf32>
    %349 = arith.index_cast %306 : i32 to index
    %c0_85 = arith.constant 0 : index
    %350 = vector.load %arg10[%349, %c0_85] : memref<64x32xf32, #tpu.memory_space<vmem>>, vector<8x32xf32>
    tpu.vector_store %arg10[%349, %c0_85], %339 {strides = array<i32>} : memref<64x32xf32, #tpu.memory_space<vmem>>, vector<8x32xf32>,
    %351 = arith.index_cast %308 : i32 to index
    %c0_86 = arith.constant 0 : index
    %352 = vector.load %arg11[%351, %c0_86] : memref<64x32xf32, #tpu.memory_space<vmem>>, vector<8x32xf32>
    tpu.vector_store %arg11[%351, %c0_86], %348 {strides = array<i32>} : memref<64x32xf32, #tpu.memory_space<vmem>>, vector<8x32xf32>,
    %c7_i32_87 = arith.constant 7 : i32
    %c7_i32_88 = arith.constant 7 : i32
    %353 = arith.subi %c7_i32_88, %c7_i32_87 : i32
    %c8_i32_89 = arith.constant 8 : i32
    %354 = arith.muli %c7_i32_87, %c8_i32_89 : i32
    %355 = tpu.assume_multiple %354, 8 : i32
    %c8_i32_90 = arith.constant 8 : i32
    %356 = arith.muli %353, %c8_i32_90 : i32
    %357 = tpu.assume_multiple %356, 8 : i32
    %358 = arith.index_cast %355 : i32 to index
    %c0_91 = arith.constant 0 : index
    %359 = vector.load %arg9[%358, %c0_91] : memref<64x256xf32, #tpu.memory_space<vmem>>, vector<8x256xf32>
    %360 = arith.index_cast %357 : i32 to index
    %c0_92 = arith.constant 0 : index
    %361 = vector.load %arg9[%360, %c0_92] : memref<64x256xf32, #tpu.memory_space<vmem>>, vector<8x256xf32>
    %cst_93 = arith.constant dense<0.000000e+00> : vector<8x128xf32>
    %362 = tpu.matmul %339, %7, %cst_93 {dimension_numbers = #tpu.dot_dimension_numbers<[1], [0], [0], [1], [0, 0, 1, 1], [], []>} : vector<8x32xf32>, vector<32x128xf32>, vector<8x128xf32> -> vector<8x128xf32>
    %363 = vector.extract_strided_slice %359 {offsets = [0, 0], sizes = [8, 128], strides = [1, 1]} : vector<8x256xf32> to vector<8x128xf32>
    %364 = arith.addf %362, %363 : vector<8x128xf32>
    %cst_94 = arith.constant dense<0.000000e+00> : vector<8x128xf32>
    %365 = tpu.matmul %348, %8, %cst_94 {dimension_numbers = #tpu.dot_dimension_numbers<[1], [0], [0], [1], [0, 0, 1, 1], [], []>} : vector<8x32xf32>, vector<32x128xf32>, vector<8x128xf32> -> vector<8x128xf32>
    %366 = vector.extract_strided_slice %361 {offsets = [0, 128], sizes = [8, 128], strides = [1, 1]} : vector<8x256xf32> to vector<8x128xf32>
    %367 = arith.addf %365, %366 : vector<8x128xf32>
    %368 = arith.negf %364 : vector<8x128xf32>
    %369 = math.exp %368 : vector<8x128xf32>
    %cst_95 = arith.constant 1.000000e+00 : f32
    %370 = vector.broadcast %cst_95 : f32 to vector<8x128xf32>
    %371 = arith.addf %370, %369 : vector<8x128xf32>
    %372 = arith.divf %370, %371 : vector<8x128xf32>
    %373 = math.tanh %364 : vector<8x128xf32>
    %374 = arith.negf %367 : vector<8x128xf32>
    %375 = math.exp %374 : vector<8x128xf32>
    %cst_96 = arith.constant 1.000000e+00 : f32
    %376 = vector.broadcast %cst_96 : f32 to vector<8x128xf32>
    %377 = arith.addf %376, %375 : vector<8x128xf32>
    %378 = arith.divf %376, %377 : vector<8x128xf32>
    %379 = math.tanh %367 : vector<8x128xf32>
    %380 = vector.extract_strided_slice %372 {offsets = [0, 32], sizes = [8, 32], strides = [1, 1]} : vector<8x128xf32> to vector<8x32xf32>
    %381 = arith.mulf %380, %336 : vector<8x32xf32>
    %382 = vector.extract_strided_slice %372 {offsets = [0, 0], sizes = [8, 32], strides = [1, 1]} : vector<8x128xf32> to vector<8x32xf32>
    %383 = vector.extract_strided_slice %373 {offsets = [0, 64], sizes = [8, 32], strides = [1, 1]} : vector<8x128xf32> to vector<8x32xf32>
    %384 = arith.mulf %382, %383 : vector<8x32xf32>
    %385 = arith.addf %381, %384 : vector<8x32xf32>
    %386 = vector.extract_strided_slice %372 {offsets = [0, 96], sizes = [8, 32], strides = [1, 1]} : vector<8x128xf32> to vector<8x32xf32>
    %387 = math.tanh %385 : vector<8x32xf32>
    %388 = arith.mulf %386, %387 : vector<8x32xf32>
    %389 = vector.extract_strided_slice %378 {offsets = [0, 32], sizes = [8, 32], strides = [1, 1]} : vector<8x128xf32> to vector<8x32xf32>
    %390 = arith.mulf %389, %345 : vector<8x32xf32>
    %391 = vector.extract_strided_slice %378 {offsets = [0, 0], sizes = [8, 32], strides = [1, 1]} : vector<8x128xf32> to vector<8x32xf32>
    %392 = vector.extract_strided_slice %379 {offsets = [0, 64], sizes = [8, 32], strides = [1, 1]} : vector<8x128xf32> to vector<8x32xf32>
    %393 = arith.mulf %391, %392 : vector<8x32xf32>
    %394 = arith.addf %390, %393 : vector<8x32xf32>
    %395 = vector.extract_strided_slice %378 {offsets = [0, 96], sizes = [8, 32], strides = [1, 1]} : vector<8x128xf32> to vector<8x32xf32>
    %396 = math.tanh %394 : vector<8x32xf32>
    %397 = arith.mulf %395, %396 : vector<8x32xf32>
    %398 = arith.index_cast %355 : i32 to index
    %c0_97 = arith.constant 0 : index
    %399 = vector.load %arg10[%398, %c0_97] : memref<64x32xf32, #tpu.memory_space<vmem>>, vector<8x32xf32>
    tpu.vector_store %arg10[%398, %c0_97], %388 {strides = array<i32>} : memref<64x32xf32, #tpu.memory_space<vmem>>, vector<8x32xf32>,
    %400 = arith.index_cast %357 : i32 to index
    %c0_98 = arith.constant 0 : index
    %401 = vector.load %arg11[%400, %c0_98] : memref<64x32xf32, #tpu.memory_space<vmem>>, vector<8x32xf32>
    tpu.vector_store %arg11[%400, %c0_98], %397 {strides = array<i32>} : memref<64x32xf32, #tpu.memory_space<vmem>>, vector<8x32xf32>,
    %c8_i32_99 = arith.constant 8 : i32
    %c0_100 = arith.constant 0 : index
    %c0_101 = arith.constant 0 : index
    %402 = vector.load %arg10[%c0_100, %c0_101] : memref<64x32xf32, #tpu.memory_space<vmem>>, vector<64x32xf32>
    %c0_102 = arith.constant 0 : index
    %c0_103 = arith.constant 0 : index
    %403 = vector.load %arg5[%c0_102, %c0_103] : memref<32x16xf32, #tpu.memory_space<vmem>>, vector<32x16xf32>
    %cst_104 = arith.constant dense<0.000000e+00> : vector<64x16xf32>
    %404 = tpu.matmul %402, %403, %cst_104 {dimension_numbers = #tpu.dot_dimension_numbers<[1], [0], [0], [1], [0, 0, 1, 1], [], []>} : vector<64x32xf32>, vector<32x16xf32>, vector<64x16xf32> -> vector<64x16xf32>
    %c0_105 = arith.constant 0 : index
    %c0_106 = arith.constant 0 : index
    %405 = vector.load %arg11[%c0_105, %c0_106] : memref<64x32xf32, #tpu.memory_space<vmem>>, vector<64x32xf32>
    %c0_107 = arith.constant 0 : index
    %c0_108 = arith.constant 0 : index
    %406 = vector.load %arg6[%c0_107, %c0_108] : memref<32x16xf32, #tpu.memory_space<vmem>>, vector<32x16xf32>
    %cst_109 = arith.constant dense<0.000000e+00> : vector<64x16xf32>
    %407 = tpu.matmul %405, %406, %cst_109 {dimension_numbers = #tpu.dot_dimension_numbers<[1], [0], [0], [1], [0, 0, 1, 1], [], []>} : vector<64x32xf32>, vector<32x16xf32>, vector<64x16xf32> -> vector<64x16xf32>
    %408 = arith.addf %404, %407 : vector<64x16xf32>
    %c0_110 = arith.constant 0 : index
    %c0_111 = arith.constant 0 : index
    %409 = vector.load %arg7[%c0_110, %c0_111] : memref<1x16xf32, #tpu.memory_space<vmem>>, vector<1x16xf32>
    %410 = vector.broadcast %409 : vector<1x16xf32> to vector<64x16xf32>
    %411 = arith.addf %408, %410 : vector<64x16xf32>
    %c0_112 = arith.constant 0 : index
    %c0_113 = arith.constant 0 : index
    %412 = vector.load %arg8[%c0_112, %c0_113] : memref<64x16xf32, #tpu.memory_space<vmem>>, vector<64x16xf32>
    tpu.vector_store %arg8[%c0_112, %c0_113], %411 {strides = array<i32>} : memref<64x16xf32, #tpu.memory_space<vmem>>, vector<64x16xf32>,
    return
  }
}

</mosaic_0001>

<bundles_post_ra>
// kernel: tpu_custom_call.1
= control target key start
LH: loop header
LB: loop body
LE: loop exit
PB: predicated region body
PF: predicated region fallthrough
CT: control target
= control target key end

     0   :  { %v2716_v0 = vmov 0.0   ;;  %vm53_vm0 = vcmask 130048   ;;  %vm2717_vm1 = vmmov 0   ;;  %v43_v21 = vlaneseq  ;;  %s3305_s1 = inlined_call_operand.vmem [shape: f32[16,256], index: 1, kind: input, shape index: {}]   ;;  %s3306_s2 = inlined_call_operand.vmem [shape: f32[32,128], index: 2, kind: input, shape index: {}]   ;;  %s3307_s0 = inlined_call_operand.vmem [shape: f32[64,16], index: 0, kind: input, shape index: {}]   ;;  %s3308_s3 = inlined_call_operand.vmem [shape: f32[32,128], index: 3, kind: input, shape index: {}]   ;;  %s3309_s4 = inlined_call_operand.vmem [shape: f32[1,256], index: 4, kind: input, shape index: {}]   ;;  %s3310_s5 = inlined_call_operand.vmem [shape: f32[32,16], index: 5, kind: input, shape index: {}]   ;;  %s3311_s6 = inlined_call_operand.vmem [shape: f32[32,16], index: 6, kind: input, shape index: {}]   ;;  %s3312_s7 = inlined_call_operand.vmem [shape: f32[1,16], index: 7, kind: input, shape index: {}]   ;;  %s3313_s8 = inlined_call_operand.vmem [shape: f32[64,16], index: 8, kind: output, shape index: {}]  }
   0x1   :  { %2360 = vmatprep.subr.mxu1 %v2716_v0  ;;  %v40_v1 = vld [vmem:[%s3305_s1 + $0x18] sm:$0xff]  ;;  %v39_v3 = vld [vmem:[%s3305_s1 + $0x10] sm:$0xff]  ;;  %142 = vmatprep.mubr.f32.mxu0 %v2716_v0  ;;  %v38_v4 = vld [vmem:[%s3305_s1 + $0x8] sm:$0xff]  ;;  %vm223_vm2 = vcmask 261120  }
   0x2   :  { %v2772_v2 = vld [vmem:[%s3306_s2 + $0x18] sm:$0xff]  ;;  %106 = vmatprep.subr.mxu0 %v40_v1  ;;  %v2785_v5 = vld [vmem:[%s3306_s2 + $0x10] sm:$0xff]  ;;  %v37_v6 = vld [vmem:[%s3305_s1] sm:$0xff]  ;;  %2368 = vmatprep.mubr.msk.f32.mxu1 %vm2717_vm1, %v2716_v0  ;;  %v44_v22 = vshrl.u32 %v43_v21, 7 }
   0x3   :  { %2361 = vmatpush3.msra.mxu1 %v2772_v2  ;;  %107 = vmatpush1.msra.mxu0 %v39_v3  ;;  %v29_v7 = vld [vmem:[%s3307_s0] sm:$0xff]  ;;  %v2797_v8 = vld [vmem:[%s3306_s2 + $0x8] sm:$0xff]  ;;  %v2817_v11 = vld [vmem:[%s3308_s3 + $0x18] sm:$0xff] }
   0x4   :  { %2362 = vmatprep.subr.mxu1 %v2716_v0  ;;  %108 = vmatprep.subr.mxu0 %v38_v4  ;;  %v2804_v9 = vld [vmem:[%s3306_s2] sm:$0xff]  ;;  %v30_v10 = vld [vmem:[%s3307_s0 + $0x8] sm:$0xff]  ;;  %v2826_v12 = vld [vmem:[%s3308_s3 + $0x10] sm:$0xff]  ;;  %v45_v23 = vsub.s32 0, %v44_v22  ;;  %v49_v25 = vsub.s32 1, %v44_v22 }
   0x5   :  { %2363 = vmatpush3.msra.mxu1 %v2785_v5  ;;  %109 = vmatpush1.msra.mxu0 %v37_v6  ;;  %v31_v13 = vld [vmem:[%s3307_s0 + $0x10] sm:$0xff]  ;;  %v2838_v14 = vld [vmem:[%s3308_s3 + $0x8] sm:$0xff]  ;;  %v2847_v15 = vld [vmem:[%s3308_s3] sm:$0xff] }
   0x6   :  { %2364 = vmatprep.subr.mxu1 %v2716_v0  ;;  %2201 = vmatmul.mubr.msk.f32.vlgmr.msra.gmra.mxu0 %vm53_vm0, %v29_v7  ;;  %v32_v16 = vld [vmem:[%s3307_s0 + $0x18] sm:$0xff]  ;;  %v33_v17 = vld [vmem:[%s3307_s0 + $0x20] sm:$0xff]  ;;  %v34_v18 = vld [vmem:[%s3307_s0 + $0x28] sm:$0xff] }
   0x7   :  { %2365 = vmatpush3.msra.mxu1 %v2797_v8  ;;  %148 = vmatprep.mubr.f32.mxu0 %v2716_v0  ;;  %v35_v19 = vld [vmem:[%s3307_s0 + $0x30] sm:$0xff]  ;;  %v36_v20 = vld [vmem:[%s3307_s0 + $0x38] sm:$0xff]  ;;  %v41_v24 = vld [vmem:[%s3309_s4] sm:$0x3]  ;;  %s2718_s0 = smov 64   ;;  %s2719_s4 = smov 32  }
   0x8   :  { %2366 = vmatprep.subr.mxu1 %v2716_v0  ;;  %2404 = vmatprep.subr.mxu0 %v2716_v0  ;;  %v46_v26 = vrot.slane %v41_v24, %v45_v23  ;;  %v50_v27 = vrot.slane %v41_v24, %v49_v25 }
   0x9   :  { %2367 = vmatpush3.msra.mxu1 %v2804_v9  ;;  %2405 = vmatpush3.msra.mxu0 %v2772_v2 }
   0xa   :  { %2369 = vmatmul.mubr.f32.vlgmr.msra.gmra.mxu1 %v2716_v0  ;;  %2371 = vmatprep.subr.mxu1 %v2716_v0 }
   0xb   :  { %2202 = vmatmul.mubr.msk.f32.gmra.mxu0 %vm53_vm0, %v30_v10  ;;  %2372 = vmatpush3.msra.mxu1 %v2817_v11 }
   0xc   :  { %154 = vmatprep.mubr.f32.mxu0 %v2716_v0  ;;  %2373 = vmatprep.subr.mxu1 %v2716_v0 }
   0xd   :  { %2374 = vmatpush3.msra.mxu1 %v2826_v12  ;;  %2379 = vmatprep.mubr.msk.f32.mxu1 %vm2717_vm1, %v2716_v0 }
   0xe   :  { %2375 = vmatprep.subr.mxu1 %v2716_v0  ;;  %2406 = vmatprep.subr.mxu0 %v2716_v0 }
   0xf   :  { %2203 = vmatmul.mubr.msk.f32.gmra.mxu0 %vm53_vm0, %v31_v13  ;;  %2376 = vmatpush3.msra.mxu1 %v2838_v14 }
  0x10   :  { %160 = vmatprep.mubr.f32.mxu0 %v2716_v0  ;;  %2377 = vmatprep.subr.mxu1 %v2716_v0 }
  0x11   :  { %2378 = vmatpush3.msra.mxu1 %v2847_v15  ;;  %2407 = vmatpush3.msra.mxu0 %v2785_v5 }
  0x12   :  { %2380 = vmatmul.mubr.f32.vlgmr.msra.gmra.mxu1 %v2716_v0  ;;  %2382 = vmatprep.subr.mxu1 %v2716_v0 }
  0x13   :  { %2204 = vmatmul.mubr.msk.f32.gmra.mxu0 %vm53_vm0, %v32_v16  ;;  %2383 = vmatpush3.msra.mxu1 %v2772_v2 }
  0x14   :  { %166 = vmatprep.mubr.f32.mxu0 %v2716_v0  ;;  %2384 = vmatprep.subr.mxu1 %v2716_v0 }
  0x15   :  { %2385 = vmatpush3.msra.mxu1 %v2785_v5  ;;  %2390 = vmatprep.mubr.msk.f32.mxu1 %vm2717_vm1, %v2716_v0 }
  0x16   :  { %2386 = vmatprep.subr.mxu1 %v2716_v0  ;;  %2408 = vmatprep.subr.mxu0 %v2716_v0 }
  0x17   :  { %2205 = vmatmul.mubr.msk.f32.gmra.mxu0 %vm53_vm0, %v33_v17  ;;  %2387 = vmatpush3.msra.mxu1 %v2797_v8 }
  0x18   :  { %172 = vmatprep.mubr.f32.mxu0 %v2716_v0  ;;  %2388 = vmatprep.subr.mxu1 %v2716_v0 }
  0x19   :  { %2389 = vmatpush3.msra.mxu1 %v2804_v9  ;;  %2409 = vmatpush3.msra.mxu0 %v2797_v8 }
  0x1a   :  { %2393 = vmatprep.subr.mxu1 %v2716_v0  ;;  %2410 = vmatprep.subr.mxu0 %v2716_v0 }
  0x1b   :  { %2206 = vmatmul.mubr.msk.f32.gmra.mxu0 %vm53_vm0, %v34_v18 }
  0x1c   :  { %178 = vmatprep.mubr.f32.mxu0 %v2716_v0  ;;  %2411 = vmatpush3.msra.mxu0 %v2804_v9 }
  0x1d   :  { %2426 = vmatprep.subr.mxu0 %v2716_v0 }
  0x1f   :  { %2207 = vmatmul.mubr.msk.f32.gmra.mxu0 %vm53_vm0, %v35_v19 }
  0x20   :  { %184 = vmatprep.mubr.f32.mxu0 %v2716_v0 }
  0x23   :  { %2208 = vmatmul.mubr.msk.f32.gmra.mxu0 %vm53_vm0, %v36_v20 }
  0x24   :  { %2412 = vmatprep.mubr.msk.f32.mxu0 %vm2717_vm1, %v2716_v0 }
  0xc6   :  { %v144_v28 = vpop.f32.mrf.mxu0 }
  0xc7   :  { %v145_v29 = vadd.f32 %v144_v28, %v46_v26 }
  0xc8   :  { %v146_v30 = vpop.f32.mrf.mxu0 }
  0xc9   :  { %v2904_v31 = vadd.f32 %v146_v30, %v50_v27 }
  0xca   :  { %v293_v32 = vpop.f32.mrf.mxu1 }
  0xcb   :  { %v294_v33 = vadd.f32 %v293_v32, %v145_v29  ;;  %v150_v34 = vpop.f32.mrf.mxu0 }
  0xcc   :  { %v2906_v35 = vadd.f32 %v150_v34, %v46_v26  ;;  %v2370_v36 = vpop.f32.mrf.mxu1 }
  0xcd   :  { %2580 = vtanh.f32 %v294_v33  ;;  %v152_v37 = vpop.f32.mrf.mxu0  ;;  %v2209_v7 = vmul.f32 -1.442695, %v294_v33 }
  0xce   :  { %v2908_v38 = vadd.f32 %v152_v37, %v50_v27 }
  0xcf   :  { %v156_v39 = vpop.f32.mrf.mxu0 }
  0xd0   :  { %v2910_v40 = vadd.f32 %v156_v39, %v46_v26 }
  0xd1   :  { %v158_v41 = vpop.f32.mrf.mxu0 }
  0xd2   :  { %v2912_v42 = vadd.f32 %v158_v41, %v50_v27  ;;  %v363_v43 = vpop.f32.mrf.mxu1 }
  0xd3   :  { %v162_v44 = vpop.f32.mrf.mxu0 }
  0xd4   :  { %v2914_v45 = vadd.f32 %v162_v44, %v46_v26  ;;  %v2381_v46 = vpop.f32.mrf.mxu1 }
  0xd5   :  { %v164_v47 = vpop.f32.mrf.mxu0 }
  0xd6   :  { %v2916_v48 = vadd.f32 %v164_v47, %v50_v27 }
  0xd7   :  { %v168_v49 = vpop.f32.mrf.mxu0 }
  0xd8   :  { %v2918_v50 = vadd.f32 %v168_v49, %v46_v26 }
  0xd9   :  { %v170_v51 = vpop.f32.mrf.mxu0 }
  0xda   :  { %v2581_v52 = vpop.eup %2580  ;;  %v2920_v53 = vadd.f32 %v170_v51, %v50_v27 }
  0xdb   :  { %v174_v54 = vpop.f32.mrf.mxu0  ;;  %383 = vrot.lane.b32.xlu0 %v2581_v52, %s2718_s0 }
  0xdc   :  { %v2923_v55 = vadd.f32 %v174_v54, %v46_v26 }
  0xdd   :  { %v176_v56 = vpop.f32.mrf.mxu0 }
  0xde   :  { %v2925_v57 = vadd.f32 %v176_v56, %v50_v27 }
  0xdf   :  { %v180_v58 = vpop.f32.mrf.mxu0 }
  0xe0   :  { %v2927_v59 = vadd.f32 %v180_v58, %v46_v26 }
  0xe1   :  { %v182_v60 = vpop.f32.mrf.mxu0 }
  0xe2   :  { %v2929_v61 = vadd.f32 %v182_v60, %v50_v27 }
  0xe3   :  { %v186_v62 = vpop.f32.mrf.mxu0 }
  0xe4   :  { %v2931_v63 = vadd.f32 %v186_v62, %v46_v26 }
  0xe5   :  { %v188_v1 = vpop.f32.mrf.mxu0 }
  0xe6   :  { %v189_v3 = vadd.f32 %v188_v1, %v50_v27 }
  0xe8   :  { %v364_v4 = vadd.f32 %v363_v43, %v189_v3 }
  0xea   :  { %2582 = vtanh.f32 %v364_v4  ;;  %v2210_v16 = vmul.f32 -1.442695, %v364_v4 }
  0xeb   :  { %2584 = vpow2.f32 %v2209_v7 }
  0xf7   :  { %v2583_v6 = vpop.eup %2582 }
  0xf8   :  { %400 = vrot.lane.b32.xlu0 %v2583_v6, %s2718_s0  ;;  %v2585_v10 = vpop.eup %2584 }
  0xf9   :  { %v370_v13 = vadd.f32 1.0, %v2585_v10 }
  0xfb   :  { %2586 = vrcp.f32 %v370_v13 }
  0xfc   :  { %2588 = vpow2.f32 %v2210_v16 }
 0x108   :  { %v2587_v17 = vpop.eup %2586 }
 0x109   :  { %v2589_v20 = vpop.eup %2588  ;;  %v381_v25 = vmul.f32 0.0, %v2587_v17 }
 0x10a   :  { %v377_v21 = vadd.f32 1.0, %v2589_v20 }
 0x10c   :  { %2590 = vrcp.f32 %v377_v21 }
 0x119   :  { %v2591_v22 = vpop.eup %2590 }
 0x11a   :  { %v398_v29 = vmul.f32 0.0, %v2591_v22 }
 0x14d   :  { %v384_v18 = vpop.permute.xlu0 %383 }
 0x14e   :  { %v386_v19 = vmul.f32 %v2587_v17, %v384_v18 }
 0x150   :  { %388 = vrot.lane.b32.xlu1 %v386_v19, %s2719_s4 }
 0x16a   :  { %v401_v23 = vpop.permute.xlu0 %400 }
 0x16b   :  { %v403_v24 = vmul.f32 %v2591_v22, %v401_v23 }
 0x16d   :  { %405 = vrot.lane.b32.xlu1 %v403_v24, %s2719_s4 }
 0x1c2   :  { %v389_v26 = vpop.permute.xlu1 %388 }
 0x1c3   :  { %v2936_v27 = vadd.f32 %v389_v26, %v381_v25 }
 0x1c5   :  { %2592 = vtanh.f32 %v2936_v27 }
 0x1d2   :  { %v2593_v28 = vpop.eup %2592 }
 0x1d3   :  { %394 = vrot.lane.b32.xlu0 %v2593_v28, %s2718_s0 }
 0x1df   :  { %v406_v30 = vpop.permute.xlu1 %405 }
 0x1e0   :  { %v2940_v32 = vadd.f32 %v406_v30, %v398_v29 }
 0x1e2   :  { %2594 = vtanh.f32 %v2940_v32 }
 0x1ef   :  { %v2595_v33 = vpop.eup %2594 }
 0x1f0   :  { %411 = vrot.lane.b32.xlu1 %v2595_v33, %s2718_s0 }
 0x245   :  { %v395_v34 = vpop.permute.xlu0 %394 }
 0x246   :  { %v397_v36 = vmul.f32 %v2587_v17, %v395_v34 }
 0x248   :  { %416 = vrot.lane.b32.xlu0 %v397_v36, %s2719_s4 }
 0x262   :  { %v412_v37 = vpop.permute.xlu1 %411 }
 0x263   :  { %v414_v39 = vmul.f32 %v2591_v22, %v412_v37 }
 0x265   :  { %421 = vrot.lane.b32.xlu1 %v414_v39, %s2719_s4 }
 0x2ba   :  { %v417_v41 = vpop.permute.xlu0 %416 }
 0x2bb   :  { %419 = vst.msk [vmem:[#allocation3] sm:$0xff] %vm223_vm2, %v417_v41  ;;  %2391 = vmatmul.mubr.msk.f32.vlgmr.msra.gmra.mxu1 %vm223_vm2, %v417_v41 }
 0x2bc   :  { %2394 = vmatpush3.msra.mxu1 %v2817_v11  ;;  %2401 = vmatprep.mubr.msk.f32.mxu1 %vm2717_vm1, %v2716_v0 }
 0x2bd   :  { %2395 = vmatprep.subr.mxu1 %v2716_v0 }
 0x2be   :  { %2396 = vmatpush3.msra.mxu1 %v2826_v12 }
 0x2bf   :  { %2397 = vmatprep.subr.mxu1 %v2716_v0 }
 0x2c0   :  { %2398 = vmatpush3.msra.mxu1 %v2838_v14 }
 0x2c1   :  { %2399 = vmatprep.subr.mxu1 %v2716_v0 }
 0x2c2   :  { %2400 = vmatpush3.msra.mxu1 %v2847_v15 }
 0x2c3   :  { %2415 = vmatprep.subr.mxu1 %v2716_v0 }
 0x2d7   :  { %v422_v43 = vpop.permute.xlu1 %421 }
 0x2d8   :  { %425 = vst.msk [vmem:[#allocation4 + $0x38] sm:$0xff] %vm223_vm2, %v422_v43  ;;  %2402 = vmatmul.mubr.msk.f32.vlgmr.msra.gmra.mxu1 %vm223_vm2, %v422_v43 }
 0x2d9   :  { %2416 = vmatpush3.msra.mxu1 %v2817_v11  ;;  %2423 = vmatprep.mubr.msk.f32.mxu1 %vm2717_vm1, %v2716_v0 }
 0x2da   :  { %2417 = vmatprep.subr.mxu1 %v2716_v0 }
 0x2db   :  { %2418 = vmatpush3.msra.mxu1 %v2826_v12 }
 0x2dc   :  { %2419 = vmatprep.subr.mxu1 %v2716_v0 }
 0x2dd   :  { %2420 = vmatpush3.msra.mxu1 %v2838_v14 }
 0x2de   :  { %2421 = vmatprep.subr.mxu1 %v2716_v0 }
 0x2df   :  { %2422 = vmatpush3.msra.mxu1 %v2847_v15 }
 0x2e0   :  { %2437 = vmatprep.subr.mxu1 %v2716_v0 }
 0x37b   :  { %v502_v44 = vpop.f32.mrf.mxu1 }
 0x37c   :  { %v503_v46 = vadd.f32 %v502_v44, %v2906_v35 }
 0x37d   :  { %v2392_v47 = vpop.f32.mrf.mxu1 }
 0x37e   :  { %2596 = vtanh.f32 %v503_v46  ;;  %v2213_v58 = vmul.f32 -1.442695, %v503_v46 }
 0x38b   :  { %v2597_v49 = vpop.eup %2596 }
 0x38c   :  { %594 = vrot.lane.b32.xlu1 %v2597_v49, %s2718_s0 }
 0x398   :  { %v574_v51 = vpop.f32.mrf.mxu1 }
 0x399   :  { %v575_v52 = vadd.f32 %v574_v51, %v2929_v61 }
 0x39a   :  { %v2403_v54 = vpop.f32.mrf.mxu1 }
 0x39b   :  { %2598 = vtanh.f32 %v575_v52  ;;  %v2214_v1 = vmul.f32 -1.442695, %v575_v52 }
 0x39c   :  { %2600 = vpow2.f32 %v2213_v58 }
 0x3a8   :  { %v2599_v56 = vpop.eup %2598 }
 0x3a9   :  { %611 = vrot.lane.b32.xlu0 %v2599_v56, %s2718_s0  ;;  %v2601_v60 = vpop.eup %2600 }
 0x3aa   :  { %v581_v62 = vadd.f32 1.0, %v2601_v60 }
 0x3ac   :  { %2602 = vrcp.f32 %v581_v62 }
 0x3ad   :  { %2604 = vpow2.f32 %v2214_v1 }
 0x3b9   :  { %v2603_v35 = vpop.eup %2602 }
 0x3ba   :  { %v2605_v6 = vpop.eup %2604  ;;  %v592_v16 = vmul.f32 %v2603_v35, %v2936_v27 }
 0x3bb   :  { %v588_v7 = vadd.f32 1.0, %v2605_v6 }
 0x3bd   :  { %2606 = vrcp.f32 %v588_v7 }
 0x3ca   :  { %v2607_v61 = vpop.eup %2606 }
 0x3cb   :  { %v609_v20 = vmul.f32 %v2607_v61, %v2940_v32 }
 0x3fe   :  { %v595_v3 = vpop.permute.xlu1 %594 }
 0x3ff   :  { %v597_v4 = vmul.f32 %v2603_v35, %v595_v3 }
 0x401   :  { %599 = vrot.lane.b32.xlu1 %v597_v4, %s2719_s4 }
 0x41b   :  { %v612_v10 = vpop.permute.xlu0 %611 }
 0x41c   :  { %v614_v13 = vmul.f32 %v2607_v61, %v612_v10 }
 0x41e   :  { %616 = vrot.lane.b32.xlu0 %v614_v13, %s2719_s4 }
 0x473   :  { %v600_v17 = vpop.permute.xlu1 %599 }
 0x474   :  { %v2977_v18 = vadd.f32 %v600_v17, %v592_v16 }
 0x476   :  { %2608 = vtanh.f32 %v2977_v18 }
 0x483   :  { %v2609_v19 = vpop.eup %2608 }
 0x484   :  { %605 = vrot.lane.b32.xlu1 %v2609_v19, %s2718_s0 }
 0x490   :  { %v617_v21 = vpop.permute.xlu0 %616 }
 0x491   :  { %v2982_v22 = vadd.f32 %v617_v21, %v609_v20 }
 0x493   :  { %2610 = vtanh.f32 %v2982_v22 }
 0x4a0   :  { %v2611_v23 = vpop.eup %2610 }
 0x4a1   :  { %622 = vrot.lane.b32.xlu0 %v2611_v23, %s2718_s0 }
 0x4f6   :  { %v606_v24 = vpop.permute.xlu1 %605 }
 0x4f7   :  { %v608_v25 = vmul.f32 %v2603_v35, %v606_v24 }
 0x4f9   :  { %627 = vrot.lane.b32.xlu1 %v608_v25, %s2719_s4 }
 0x513   :  { %v623_v26 = vpop.permute.xlu0 %622 }
 0x514   :  { %v625_v27 = vmul.f32 %v2607_v61, %v623_v26 }
 0x516   :  { %633 = vrot.lane.b32.xlu0 %v625_v27, %s2719_s4 }
 0x56b   :  { %v628_v28 = vpop.permute.xlu1 %627 }
 0x56c   :  { %631 = vst.msk [vmem:[#allocation3 + $0x8] sm:$0xff] %vm223_vm2, %v628_v28  ;;  %2413 = vmatmul.mubr.msk.f32.vlgmr.msra.gmra.mxu0 %vm223_vm2, %v628_v28 }
 0x56d   :  { %2427 = vmatpush3.msra.mxu0 %v2772_v2  ;;  %2434 = vmatprep.mubr.msk.f32.mxu0 %vm2717_vm1, %v2716_v0 }
 0x56e   :  { %2428 = vmatprep.subr.mxu0 %v2716_v0 }
 0x56f   :  { %2429 = vmatpush3.msra.mxu0 %v2785_v5 }
 0x570   :  { %2430 = vmatprep.subr.mxu0 %v2716_v0 }
 0x571   :  { %2431 = vmatpush3.msra.mxu0 %v2797_v8 }
 0x572   :  { %2432 = vmatprep.subr.mxu0 %v2716_v0 }
 0x573   :  { %2433 = vmatpush3.msra.mxu0 %v2804_v9 }
 0x574   :  { %2448 = vmatprep.subr.mxu0 %v2716_v0 }
 0x588   :  { %v634_v29 = vpop.permute.xlu0 %633 }
 0x589   :  { %637 = vst.msk [vmem:[#allocation4 + $0x30] sm:$0xff] %vm223_vm2, %v634_v29  ;;  %2424 = vmatmul.mubr.msk.f32.vlgmr.msra.gmra.mxu1 %vm223_vm2, %v634_v29 }
 0x58a   :  { %2438 = vmatpush3.msra.mxu1 %v2817_v11  ;;  %2445 = vmatprep.mubr.msk.f32.mxu1 %vm2717_vm1, %v2716_v0 }
 0x58b   :  { %2439 = vmatprep.subr.mxu1 %v2716_v0 }
 0x58c   :  { %2440 = vmatpush3.msra.mxu1 %v2826_v12 }
 0x58d   :  { %2441 = vmatprep.subr.mxu1 %v2716_v0 }
 0x58e   :  { %2442 = vmatpush3.msra.mxu1 %v2838_v14 }
 0x58f   :  { %2443 = vmatprep.subr.mxu1 %v2716_v0 }
 0x590   :  { %2444 = vmatpush3.msra.mxu1 %v2847_v15 }
 0x591   :  { %2459 = vmatprep.subr.mxu1 %v2716_v0 }
 0x62c   :  { %v714_v30 = vpop.f32.mrf.mxu0 }
 0x62d   :  { %v715_v32 = vadd.f32 %v714_v30, %v2910_v40 }
 0x62e   :  { %v2414_v33 = vpop.f32.mrf.mxu0 }
 0x62f   :  { %2612 = vtanh.f32 %v715_v32  ;;  %v2217_v43 = vmul.f32 -1.442695, %v715_v32 }
 0x63c   :  { %v2613_v34 = vpop.eup %2612 }
 0x63d   :  { %806 = vrot.lane.b32.xlu1 %v2613_v34, %s2718_s0 }
 0x649   :  { %v786_v36 = vpop.f32.mrf.mxu1 }
 0x64a   :  { %v787_v37 = vadd.f32 %v786_v36, %v2925_v57 }
 0x64b   :  { %v2425_v39 = vpop.f32.mrf.mxu1 }
 0x64c   :  { %2614 = vtanh.f32 %v787_v37  ;;  %v2218_v47 = vmul.f32 -1.442695, %v787_v37 }
 0x64d   :  { %2616 = vpow2.f32 %v2217_v43 }
 0x659   :  { %v2615_v41 = vpop.eup %2614 }
 0x65a   :  { %823 = vrot.lane.b32.xlu0 %v2615_v41, %s2718_s0  ;;  %v2617_v44 = vpop.eup %2616 }
 0x65b   :  { %v793_v46 = vadd.f32 1.0, %v2617_v44 }
 0x65d   :  { %2618 = vrcp.f32 %v793_v46 }
 0x65e   :  { %2620 = vpow2.f32 %v2218_v47 }
 0x66a   :  { %v2619_v40 = vpop.eup %2618 }
 0x66b   :  { %v2621_v52 = vpop.eup %2620  ;;  %v804_v60 = vmul.f32 %v2619_v40, %v2977_v18 }
 0x66c   :  { %v800_v54 = vadd.f32 1.0, %v2621_v52 }
 0x66e   :  { %2622 = vrcp.f32 %v800_v54 }
 0x67b   :  { %v2623_v57 = vpop.eup %2622 }
 0x67c   :  { %v821_v3 = vmul.f32 %v2623_v57, %v2982_v22 }
 0x6af   :  { %v807_v49 = vpop.permute.xlu1 %806 }
 0x6b0   :  { %v809_v51 = vmul.f32 %v2619_v40, %v807_v49 }
 0x6b2   :  { %811 = vrot.lane.b32.xlu1 %v809_v51, %s2719_s4 }
 0x6cc   :  { %v824_v56 = vpop.permute.xlu0 %823 }
 0x6cd   :  { %v826_v58 = vmul.f32 %v2623_v57, %v824_v56 }
 0x6cf   :  { %828 = vrot.lane.b32.xlu0 %v826_v58, %s2719_s4 }
 0x724   :  { %v812_v62 = vpop.permute.xlu1 %811 }
 0x725   :  { %v3019_v1 = vadd.f32 %v812_v62, %v804_v60 }
 0x727   :  { %2624 = vtanh.f32 %v3019_v1 }
 0x734   :  { %v2625_v35 = vpop.eup %2624 }
 0x735   :  { %817 = vrot.lane.b32.xlu1 %v2625_v35, %s2718_s0 }
 0x741   :  { %v829_v4 = vpop.permute.xlu0 %828 }
 0x742   :  { %v3024_v6 = vadd.f32 %v829_v4, %v821_v3 }
 0x744   :  { %2626 = vtanh.f32 %v3024_v6 }
 0x751   :  { %v2627_v7 = vpop.eup %2626 }
 0x752   :  { %834 = vrot.lane.b32.xlu0 %v2627_v7, %s2718_s0 }
 0x7a7   :  { %v818_v61 = vpop.permute.xlu1 %817 }
 0x7a8   :  { %v820_v10 = vmul.f32 %v2619_v40, %v818_v61 }
 0x7aa   :  { %839 = vrot.lane.b32.xlu1 %v820_v10, %s2719_s4 }
 0x7c4   :  { %v835_v13 = vpop.permute.xlu0 %834 }
 0x7c5   :  { %v837_v16 = vmul.f32 %v2623_v57, %v835_v13 }
 0x7c7   :  { %845 = vrot.lane.b32.xlu0 %v837_v16, %s2719_s4 }
 0x81c   :  { %v840_v17 = vpop.permute.xlu1 %839 }
 0x81d   :  { %843 = vst.msk [vmem:[#allocation3 + $0x10] sm:$0xff] %vm223_vm2, %v840_v17  ;;  %2435 = vmatmul.mubr.msk.f32.vlgmr.msra.gmra.mxu0 %vm223_vm2, %v840_v17 }
 0x81e   :  { %2449 = vmatpush3.msra.mxu0 %v2772_v2  ;;  %2456 = vmatprep.mubr.msk.f32.mxu0 %vm2717_vm1, %v2716_v0 }
 0x81f   :  { %2450 = vmatprep.subr.mxu0 %v2716_v0 }
 0x820   :  { %2451 = vmatpush3.msra.mxu0 %v2785_v5 }
 0x821   :  { %2452 = vmatprep.subr.mxu0 %v2716_v0 }
 0x822   :  { %2453 = vmatpush3.msra.mxu0 %v2797_v8 }
 0x823   :  { %2454 = vmatprep.subr.mxu0 %v2716_v0 }
 0x824   :  { %2455 = vmatpush3.msra.mxu0 %v2804_v9 }
 0x825   :  { %2470 = vmatprep.subr.mxu0 %v2716_v0 }
 0x839   :  { %v846_v18 = vpop.permute.xlu0 %845 }
 0x83a   :  { %849 = vst.msk [vmem:[#allocation4 + $0x28] sm:$0xff] %vm223_vm2, %v846_v18  ;;  %2446 = vmatmul.mubr.msk.f32.vlgmr.msra.gmra.mxu1 %vm223_vm2, %v846_v18 }
 0x83b   :  { %2460 = vmatpush3.msra.mxu1 %v2817_v11  ;;  %2467 = vmatprep.mubr.msk.f32.mxu1 %vm2717_vm1, %v2716_v0 }
 0x83c   :  { %2461 = vmatprep.subr.mxu1 %v2716_v0 }
 0x83d   :  { %2462 = vmatpush3.msra.mxu1 %v2826_v12 }
 0x83e   :  { %2463 = vmatprep.subr.mxu1 %v2716_v0 }
 0x83f   :  { %2464 = vmatpush3.msra.mxu1 %v2838_v14 }
 0x840   :  { %2465 = vmatprep.subr.mxu1 %v2716_v0 }
 0x841   :  { %2466 = vmatpush3.msra.mxu1 %v2847_v15 }
 0x842   :  { %2481 = vmatprep.subr.mxu1 %v2716_v0 }
 0x8dd   :  { %v926_v19 = vpop.f32.mrf.mxu0 }
 0x8de   :  { %v927_v20 = vadd.f32 %v926_v19, %v2914_v45 }
 0x8df   :  { %v2436_v21 = vpop.f32.mrf.mxu0 }
 0x8e0   :  { %2628 = vtanh.f32 %v927_v20  ;;  %v2221_v27 = vmul.f32 -1.442695, %v927_v20 }
 0x8ed   :  { %v2629_v22 = vpop.eup %2628 }
 0x8ee   :  { %1018 = vrot.lane.b32.xlu1 %v2629_v22, %s2718_s0 }
 0x8fa   :  { %v998_v23 = vpop.f32.mrf.mxu1 }
 0x8fb   :  { %v999_v24 = vadd.f32 %v998_v23, %v2920_v53 }
 0x8fc   :  { %v2447_v25 = vpop.f32.mrf.mxu1 }
 0x8fd   :  { %2630 = vtanh.f32 %v999_v24  ;;  %v2222_v30 = vmul.f32 -1.442695, %v999_v24 }
 0x8fe   :  { %2632 = vpow2.f32 %v2221_v27 }
 0x90a   :  { %v2631_v26 = vpop.eup %2630 }
 0x90b   :  { %1035 = vrot.lane.b32.xlu0 %v2631_v26, %s2718_s0  ;;  %v2633_v28 = vpop.eup %2632 }
 0x90c   :  { %v1005_v29 = vadd.f32 1.0, %v2633_v28 }
 0x90e   :  { %2634 = vrcp.f32 %v1005_v29 }
 0x90f   :  { %2636 = vpow2.f32 %v2222_v30 }
 0x91b   :  { %v2635_v45 = vpop.eup %2634 }
 0x91c   :  { %v2637_v34 = vpop.eup %2636  ;;  %v1016_v41 = vmul.f32 %v2635_v45, %v3019_v1 }
 0x91d   :  { %v1012_v36 = vadd.f32 1.0, %v2637_v34 }
 0x91f   :  { %2638 = vrcp.f32 %v1012_v36 }
 0x92c   :  { %v2639_v53 = vpop.eup %2638 }
 0x92d   :  { %v1033_v47 = vmul.f32 %v2639_v53, %v3024_v6 }
 0x960   :  { %v1019_v32 = vpop.permute.xlu1 %1018 }
 0x961   :  { %v1021_v33 = vmul.f32 %v2635_v45, %v1019_v32 }
 0x963   :  { %1023 = vrot.lane.b32.xlu1 %v1021_v33, %s2719_s4 }
 0x97d   :  { %v1036_v37 = vpop.permute.xlu0 %1035 }
 0x97e   :  { %v1038_v39 = vmul.f32 %v2639_v53, %v1036_v37 }
 0x980   :  { %1040 = vrot.lane.b32.xlu0 %v1038_v39, %s2719_s4 }
 0x9d5   :  { %v1024_v43 = vpop.permute.xlu1 %1023 }
 0x9d6   :  { %v3061_v44 = vadd.f32 %v1024_v43, %v1016_v41 }
 0x9d8   :  { %2640 = vtanh.f32 %v3061_v44 }
 0x9e5   :  { %v2641_v46 = vpop.eup %2640 }
 0x9e6   :  { %1029 = vrot.lane.b32.xlu1 %v2641_v46, %s2718_s0 }
 0x9f2   :  { %v1041_v40 = vpop.permute.xlu0 %1040 }
 0x9f3   :  { %v3066_v49 = vadd.f32 %v1041_v40, %v1033_v47 }
 0x9f5   :  { %2642 = vtanh.f32 %v3066_v49 }
 0xa02   :  { %v2643_v51 = vpop.eup %2642 }
 0xa03   :  { %1046 = vrot.lane.b32.xlu0 %v2643_v51, %s2718_s0 }
 0xa58   :  { %v1030_v52 = vpop.permute.xlu1 %1029 }
 0xa59   :  { %v1032_v54 = vmul.f32 %v2635_v45, %v1030_v52 }
 0xa5b   :  { %1051 = vrot.lane.b32.xlu1 %v1032_v54, %s2719_s4 }
 0xa75   :  { %v1047_v57 = vpop.permute.xlu0 %1046 }
 0xa76   :  { %v1049_v56 = vmul.f32 %v2639_v53, %v1047_v57 }
 0xa78   :  { %1057 = vrot.lane.b32.xlu0 %v1049_v56, %s2719_s4 }
 0xacd   :  { %v1052_v58 = vpop.permute.xlu1 %1051 }
 0xace   :  { %1055 = vst.msk [vmem:[#allocation3 + $0x18] sm:$0xff] %vm223_vm2, %v1052_v58  ;;  %2457 = vmatmul.mubr.msk.f32.vlgmr.msra.gmra.mxu0 %vm223_vm2, %v1052_v58 }
 0xacf   :  { %2471 = vmatpush3.msra.mxu0 %v2772_v2  ;;  %2478 = vmatprep.mubr.msk.f32.mxu0 %vm2717_vm1, %v2716_v0 }
 0xad0   :  { %2472 = vmatprep.subr.mxu0 %v2716_v0 }
 0xad1   :  { %2473 = vmatpush3.msra.mxu0 %v2785_v5 }
 0xad2   :  { %2474 = vmatprep.subr.mxu0 %v2716_v0 }
 0xad3   :  { %2475 = vmatpush3.msra.mxu0 %v2797_v8 }
 0xad4   :  { %2476 = vmatprep.subr.mxu0 %v2716_v0 }
 0xad5   :  { %2477 = vmatpush3.msra.mxu0 %v2804_v9 }
 0xad6   :  { %2492 = vmatprep.subr.mxu0 %v2716_v0 }
 0xaea   :  { %v1058_v60 = vpop.permute.xlu0 %1057 }
 0xaeb   :  { %1061 = vst.msk [vmem:[#allocation4 + $0x20] sm:$0xff] %vm223_vm2, %v1058_v60  ;;  %2468 = vmatmul.mubr.msk.f32.vlgmr.msra.gmra.mxu1 %vm223_vm2, %v1058_v60 }
 0xaec   :  { %2482 = vmatpush3.msra.mxu1 %v2817_v11  ;;  %2489 = vmatprep.mubr.msk.f32.mxu1 %vm2717_vm1, %v2716_v0 }
 0xaed   :  { %2483 = vmatprep.subr.mxu1 %v2716_v0 }
 0xaee   :  { %2484 = vmatpush3.msra.mxu1 %v2826_v12 }
 0xaef   :  { %2485 = vmatprep.subr.mxu1 %v2716_v0 }
 0xaf0   :  { %2486 = vmatpush3.msra.mxu1 %v2838_v14 }
 0xaf1   :  { %2487 = vmatprep.subr.mxu1 %v2716_v0 }
 0xaf2   :  { %2488 = vmatpush3.msra.mxu1 %v2847_v15 }
 0xaf3   :  { %2503 = vmatprep.subr.mxu1 %v2716_v0 }
 0xb8e   :  { %v1132_v62 = vpop.f32.mrf.mxu0 }
 0xb8f   :  { %v1133_v1 = vadd.f32 %v1132_v62, %v2918_v50 }
 0xb90   :  { %v2458_v35 = vpop.f32.mrf.mxu0 }
 0xb91   :  { %2644 = vtanh.f32 %v1133_v1  ;;  %v2225_v10 = vmul.f32 -1.442695, %v1133_v1 }
 0xb9e   :  { %v2645_v3 = vpop.eup %2644 }
 0xb9f   :  { %1224 = vrot.lane.b32.xlu1 %v2645_v3, %s2718_s0 }
 0xbab   :  { %v1204_v4 = vpop.f32.mrf.mxu1 }
 0xbac   :  { %v1205_v6 = vadd.f32 %v1204_v4, %v2916_v48 }
 0xbad   :  { %v2469_v7 = vpop.f32.mrf.mxu1 }
 0xbae   :  { %2646 = vtanh.f32 %v1205_v6  ;;  %v2226_v17 = vmul.f32 -1.442695, %v1205_v6 }
 0xbaf   :  { %2648 = vpow2.f32 %v2225_v10  ;;  %v2708_v10 = vld [vmem:[%s3306_s2 + $0x18] sm:$0xff] }
 0xbbb   :  { %v2647_v61 = vpop.eup %2646 }
 0xbbc   :  { %1241 = vrot.lane.b32.xlu0 %v2647_v61, %s2718_s0  ;;  %v2649_v13 = vpop.eup %2648 }
 0xbbd   :  { %v1211_v16 = vadd.f32 1.0, %v2649_v13  ;;  %v2709_v13 = vld [vmem:[%s3306_s2 + $0x10] sm:$0xff] }
 0xbbf   :  { %2650 = vrcp.f32 %v1211_v16  ;;  %v2710_v16 = vld [vmem:[%s3306_s2 + $0x8] sm:$0xff] }
 0xbc0   :  { %2652 = vpow2.f32 %v2226_v17  ;;  %v2711_v17 = vld [vmem:[%s3306_s2] sm:$0xff] }
 0xbcc   :  { %v2651_v50 = vpop.eup %2650 }
 0xbcd   :  { %v2653_v20 = vpop.eup %2652  ;;  %v1222_v24 = vmul.f32 %v2651_v50, %v3061_v44 }
 0xbce   :  { %v1218_v21 = vadd.f32 1.0, %v2653_v20  ;;  %v2714_v20 = vld [vmem:[%s3308_s3 + $0x8] sm:$0xff] }
 0xbd0   :  { %2654 = vrcp.f32 %v1218_v21  ;;  %v2715_v21 = vld [vmem:[%s3308_s3] sm:$0xff] }
 0xbdd   :  { %v2655_v48 = vpop.eup %2654 }
 0xbde   :  { %v1239_v28 = vmul.f32 %v2655_v48, %v3066_v49 }
 0xc11   :  { %v1225_v18 = vpop.permute.xlu1 %1224 }
 0xc12   :  { %v1227_v19 = vmul.f32 %v2651_v50, %v1225_v18  ;;  %v2712_v18 = vld [vmem:[%s3308_s3 + $0x18] sm:$0xff] }
 0xc14   :  { %1229 = vrot.lane.b32.xlu1 %v1227_v19, %s2719_s4  ;;  %v2713_v19 = vld [vmem:[%s3308_s3 + $0x10] sm:$0xff] }
 0xc2e   :  { %v1242_v22 = vpop.permute.xlu0 %1241 }
 0xc2f   :  { %v1244_v23 = vmul.f32 %v2655_v48, %v1242_v22 }
 0xc31   :  { %1246 = vrot.lane.b32.xlu0 %v1244_v23, %s2719_s4 }
 0xc86   :  { %v1230_v25 = vpop.permute.xlu1 %1229 }
 0xc87   :  { %v3103_v26 = vadd.f32 %v1230_v25, %v1222_v24 }
 0xc89   :  { %2656 = vtanh.f32 %v3103_v26 }
 0xc96   :  { %v2657_v27 = vpop.eup %2656 }
 0xc97   :  { %1235 = vrot.lane.b32.xlu1 %v2657_v27, %s2718_s0 }
 0xca3   :  { %v1247_v29 = vpop.permute.xlu0 %1246 }
 0xca4   :  { %v3108_v30 = vadd.f32 %v1247_v29, %v1239_v28 }
 0xca6   :  { %2658 = vtanh.f32 %v3108_v30 }
 0xcb3   :  { %v2659_v45 = vpop.eup %2658 }
 0xcb4   :  { %1252 = vrot.lane.b32.xlu0 %v2659_v45, %s2718_s0 }
 0xd09   :  { %v1236_v32 = vpop.permute.xlu1 %1235 }
 0xd0a   :  { %v1238_v33 = vmul.f32 %v2651_v50, %v1236_v32 }
 0xd0c   :  { %1257 = vrot.lane.b32.xlu1 %v1238_v33, %s2719_s4 }
 0xd26   :  { %v1253_v34 = vpop.permute.xlu0 %1252 }
 0xd27   :  { %v1255_v36 = vmul.f32 %v2655_v48, %v1253_v34 }
 0xd29   :  { %1263 = vrot.lane.b32.xlu0 %v1255_v36, %s2719_s4 }
 0xd7e   :  { %v1258_v53 = vpop.permute.xlu1 %1257 }
 0xd7f   :  { %1261 = vst.msk [vmem:[#allocation3 + $0x20] sm:$0xff] %vm223_vm2, %v1258_v53  ;;  %2479 = vmatmul.mubr.msk.f32.vlgmr.msra.gmra.mxu0 %vm223_vm2, %v1258_v53 }
 0xd80   :  { %2493 = vmatpush3.msra.mxu0 %v2772_v2  ;;  %2500 = vmatprep.mubr.msk.f32.mxu0 %vm2717_vm1, %v2716_v0 }
 0xd81   :  { %2494 = vmatprep.subr.mxu0 %v2716_v0 }
 0xd82   :  { %2495 = vmatpush3.msra.mxu0 %v2785_v5 }
 0xd83   :  { %2496 = vmatprep.subr.mxu0 %v2716_v0 }
 0xd84   :  { %2497 = vmatpush3.msra.mxu0 %v2797_v8 }
 0xd85   :  { %2498 = vmatprep.subr.mxu0 %v2716_v0 }
 0xd86   :  { %2499 = vmatpush3.msra.mxu0 %v2804_v9 }
 0xd87   :  { %2514 = vmatprep.subr.mxu0 %v2716_v0 }
 0xd9b   :  { %v1264_v37 = vpop.permute.xlu0 %1263 }
 0xd9c   :  { %1267 = vst.msk [vmem:[#allocation4 + $0x18] sm:$0xff] %vm223_vm2, %v1264_v37  ;;  %2490 = vmatmul.mubr.msk.f32.vlgmr.msra.gmra.mxu1 %vm223_vm2, %v1264_v37 }
 0xd9d   :  { %2504 = vmatpush3.msra.mxu1 %v2817_v11  ;;  %2511 = vmatprep.mubr.msk.f32.mxu1 %vm2717_vm1, %v2716_v0 }
 0xd9e   :  { %2505 = vmatprep.subr.mxu1 %v2716_v0 }
 0xd9f   :  { %2506 = vmatpush3.msra.mxu1 %v2826_v12 }
 0xda0   :  { %2507 = vmatprep.subr.mxu1 %v2716_v0 }
 0xda1   :  { %2508 = vmatpush3.msra.mxu1 %v2838_v14 }
 0xda2   :  { %2509 = vmatprep.subr.mxu1 %v2716_v0 }
 0xda3   :  { %2510 = vmatpush3.msra.mxu1 %v2847_v15 }
 0xda4   :  { %2525 = vmatprep.subr.mxu1 %v2716_v0 }
 0xe3f   :  { %v1338_v2 = vpop.f32.mrf.mxu0 }
 0xe40   :  { %v1339_v5 = vadd.f32 %v1338_v2, %v2923_v55 }
 0xe41   :  { %v2480_v8 = vpop.f32.mrf.mxu0 }
 0xe42   :  { %2660 = vtanh.f32 %v1339_v5  ;;  %v2229_v41 = vmul.f32 -1.442695, %v1339_v5 }
 0xe4f   :  { %v2661_v9 = vpop.eup %2660 }
 0xe50   :  { %1430 = vrot.lane.b32.xlu1 %v2661_v9, %s2718_s0 }
 0xe5c   :  { %v1410_v11 = vpop.f32.mrf.mxu1 }
 0xe5d   :  { %v1411_v12 = vadd.f32 %v1410_v11, %v2912_v42 }
 0xe5e   :  { %v2491_v39 = vpop.f32.mrf.mxu1 }
 0xe5f   :  { %2662 = vtanh.f32 %v1411_v12  ;;  %v2230_v44 = vmul.f32 -1.442695, %v1411_v12 }
 0xe60   :  { %2664 = vpow2.f32 %v2229_v41  ;;  %v1896_v41 = vld [vmem:[%s3310_s5 + $0x18] sm:$0xff] }
 0xe6c   :  { %v2663_v14 = vpop.eup %2662 }
 0xe6d   :  { %1447 = vrot.lane.b32.xlu0 %v2663_v14, %s2718_s0  ;;  %v2665_v15 = vpop.eup %2664 }
 0xe6e   :  { %v1417_v43 = vadd.f32 1.0, %v2665_v15 }
 0xe70   :  { %2666 = vrcp.f32 %v1417_v43 }
 0xe71   :  { %2668 = vpow2.f32 %v2230_v44 }
 0xe7d   :  { %v2667_v55 = vpop.eup %2666 }
 0xe7e   :  { %v2669_v40 = vpop.eup %2668  ;;  %v1428_v54 = vmul.f32 %v2667_v55, %v3103_v26 }
 0xe7f   :  { %v1424_v49 = vadd.f32 1.0, %v2669_v40  ;;  %v1895_v40 = vld [vmem:[%s3310_s5 + $0x10] sm:$0xff] }
 0xe81   :  { %2670 = vrcp.f32 %v1424_v49  ;;  %v1885_v49 = vld [vmem:[#allocation3] sm:$0xff] }
 0xe8e   :  { %v2671_v42 = vpop.eup %2670 }
 0xe8f   :  { %v1445_v60 = vmul.f32 %v2671_v42, %v3108_v30 }
 0xec2   :  { %v1431_v46 = vpop.permute.xlu1 %1430 }
 0xec3   :  { %v1433_v47 = vmul.f32 %v2667_v55, %v1431_v46 }
 0xec5   :  { %1435 = vrot.lane.b32.xlu1 %v1433_v47, %s2719_s4 }
 0xedf   :  { %v1448_v51 = vpop.permute.xlu0 %1447 }
 0xee0   :  { %v1450_v52 = vmul.f32 %v2671_v42, %v1448_v51  ;;  %v1893_v51 = vld [vmem:[%s3310_s5] sm:$0xff] }
 0xee2   :  { %1452 = vrot.lane.b32.xlu0 %v1450_v52, %s2719_s4  ;;  %v1886_v52 = vld [vmem:[#allocation3 + $0x8] sm:$0xff] }
 0xf37   :  { %v1436_v57 = vpop.permute.xlu1 %1435 }
 0xf38   :  { %v3145_v56 = vadd.f32 %v1436_v57, %v1428_v54  ;;  %v1887_v54 = vld [vmem:[#allocation3 + $0x10] sm:$0xff]  ;;  %v1888_v57 = vld [vmem:[#allocation3 + $0x18] sm:$0xff] }
 0xf3a   :  { %2672 = vtanh.f32 %v3145_v56 }
 0xf47   :  { %v2673_v58 = vpop.eup %2672 }
 0xf48   :  { %1441 = vrot.lane.b32.xlu1 %v2673_v58, %s2718_s0 }
 0xf54   :  { %v1453_v62 = vpop.permute.xlu0 %1452 }
 0xf55   :  { %v3150_v1 = vadd.f32 %v1453_v62, %v1445_v60 }
 0xf57   :  { %2674 = vtanh.f32 %v3150_v1 }
 0xf64   :  { %v2675_v35 = vpop.eup %2674 }
 0xf65   :  { %1458 = vrot.lane.b32.xlu0 %v2675_v35, %s2718_s0 }
 0xfba   :  { %v1442_v3 = vpop.permute.xlu1 %1441 }
 0xfbb   :  { %v1444_v4 = vmul.f32 %v2667_v55, %v1442_v3 }
 0xfbd   :  { %1463 = vrot.lane.b32.xlu1 %v1444_v4, %s2719_s4 }
 0xfd7   :  { %v1459_v6 = vpop.permute.xlu0 %1458 }
 0xfd8   :  { %v1461_v7 = vmul.f32 %v2671_v42, %v1459_v6  ;;  %v1894_v42 = vld [vmem:[%s3310_s5 + $0x8] sm:$0xff] }
 0xfda   :  { %1469 = vrot.lane.b32.xlu0 %v1461_v7, %s2719_s4 }
0x102f   :  { %v1464_v61 = vpop.permute.xlu1 %1463 }
0x1030   :  { %1467 = vst.msk [vmem:[#allocation3 + $0x28] sm:$0xff] %vm223_vm2, %v1464_v61  ;;  %2501 = vmatmul.mubr.msk.f32.vlgmr.msra.gmra.mxu0 %vm223_vm2, %v1464_v61 }
0x1031   :  { %2515 = vmatpush3.msra.mxu0 %v2708_v10  ;;  %2522 = vmatprep.mubr.msk.f32.mxu0 %vm2717_vm1, %v2716_v0 }
0x1032   :  { %2516 = vmatprep.subr.mxu0 %v2716_v0 }
0x1033   :  { %2517 = vmatpush3.msra.mxu0 %v2709_v13 }
0x1034   :  { %2518 = vmatprep.subr.mxu0 %v2716_v0 }
0x1035   :  { %2519 = vmatpush3.msra.mxu0 %v2710_v16 }
0x1036   :  { %2520 = vmatprep.subr.mxu0 %v2716_v0 }
0x1037   :  { %2521 = vmatpush3.msra.mxu0 %v2711_v17  ;;  %v1890_v58 = vld [vmem:[#allocation3 + $0x28] sm:$0xff] }
0x104c   :  { %v1470_v50 = vpop.permute.xlu0 %1469 }
0x104d   :  { %1473 = vst.msk [vmem:[#allocation4 + $0x10] sm:$0xff] %vm223_vm2, %v1470_v50  ;;  %2512 = vmatmul.mubr.msk.f32.vlgmr.msra.gmra.mxu1 %vm223_vm2, %v1470_v50 }
0x104e   :  { %2526 = vmatpush3.msra.mxu1 %v2712_v18  ;;  %2533 = vmatprep.mubr.msk.f32.mxu1 %vm2717_vm1, %v2716_v0 }
0x104f   :  { %2527 = vmatprep.subr.mxu1 %v2716_v0 }
0x1050   :  { %2528 = vmatpush3.msra.mxu1 %v2713_v19 }
0x1051   :  { %2529 = vmatprep.subr.mxu1 %v2716_v0 }
0x1052   :  { %2530 = vmatpush3.msra.mxu1 %v2714_v20 }
0x1053   :  { %2531 = vmatprep.subr.mxu1 %v2716_v0 }
0x1054   :  { %2532 = vmatpush3.msra.mxu1 %v2715_v21 }
0x1055   :  { %2556 = vmatprep.subr.mxu1 %v1896_v41 }
0x10f0   :  { %v1544_v48 = vpop.f32.mrf.mxu0 }
0x10f1   :  { %v1545_v22 = vadd.f32 %v1544_v48, %v2927_v59 }
0x10f2   :  { %v2502_v23 = vpop.f32.mrf.mxu0 }
0x10f3   :  { %2676 = vtanh.f32 %v1545_v22  ;;  %v2233_v0 = vmul.f32 -1.442695, %v1545_v22 }
0x1100   :  { %v2677_v24 = vpop.eup %2676 }
0x1101   :  { %1636 = vrot.lane.b32.xlu1 %v2677_v24, %s2718_s0 }
0x110d   :  { %v1616_v25 = vpop.f32.mrf.mxu1 }
0x110e   :  { %v1617_v26 = vadd.f32 %v1616_v25, %v2908_v38 }
0x110f   :  { %v2513_v27 = vpop.f32.mrf.mxu1 }
0x1110   :  { %2678 = vtanh.f32 %v1617_v26  ;;  %v2234_v45 = vmul.f32 -1.442695, %v1617_v26 }
0x1111   :  { %2680 = vpow2.f32 %v2233_v0 }
0x111d   :  { %v2679_v28 = vpop.eup %2678 }
0x111e   :  { %1653 = vrot.lane.b32.xlu0 %v2679_v28, %s2718_s0  ;;  %v2681_v29 = vpop.eup %2680 }
0x111f   :  { %v1623_v30 = vadd.f32 1.0, %v2681_v29 }
0x1121   :  { %2682 = vrcp.f32 %v1623_v30 }
0x1122   :  { %2684 = vpow2.f32 %v2234_v45  ;;  %v1908_v45 = vld [vmem:[%s3311_s6 + $0x18] sm:$0xff] }
0x1123   :  { %2536 = vmatprep.subr.mxu0 %v1908_v45 }
0x112e   :  { %v2683_v59 = vpop.eup %2682 }
0x112f   :  { %v2685_v34 = vpop.eup %2684  ;;  %v1634_v2 = vmul.f32 %v2683_v59, %v3145_v56  ;;  %v1889_v56 = vld [vmem:[#allocation3 + $0x20] sm:$0xff] }
0x1130   :  { %v1630_v36 = vadd.f32 1.0, %v2685_v34 }
0x1132   :  { %2686 = vrcp.f32 %v1630_v36 }
0x113f   :  { %v2687_v38 = vpop.eup %2686 }
0x1140   :  { %v1651_v11 = vmul.f32 %v2687_v38, %v3150_v1 }
0x1173   :  { %v1637_v32 = vpop.permute.xlu1 %1636 }
0x1174   :  { %v1639_v33 = vmul.f32 %v2683_v59, %v1637_v32  ;;  %v1906_v32 = vld [vmem:[%s3311_s6 + $0x8] sm:$0xff] }
0x1176   :  { %1641 = vrot.lane.b32.xlu1 %v1639_v33, %s2719_s4  ;;  %v1905_v33 = vld [vmem:[%s3311_s6] sm:$0xff] }
0x1190   :  { %v1654_v53 = vpop.permute.xlu0 %1653 }
0x1191   :  { %v1656_v37 = vmul.f32 %v2687_v38, %v1654_v53 }
0x1193   :  { %1658 = vrot.lane.b32.xlu0 %v1656_v37, %s2719_s4 }
0x11e8   :  { %v1642_v5 = vpop.permute.xlu1 %1641 }
0x11e9   :  { %v3201_v8 = vadd.f32 %v1642_v5, %v1634_v2 }
0x11eb   :  { %2688 = vtanh.f32 %v3201_v8 }
0x11f8   :  { %v2689_v9 = vpop.eup %2688 }
0x11f9   :  { %1647 = vrot.lane.b32.xlu1 %v2689_v9, %s2718_s0  ;;  %v1900_v9 = vld [vmem:[#allocation4 + $0x18] sm:$0xff] }
0x1205   :  { %v1659_v12 = vpop.permute.xlu0 %1658 }
0x1206   :  { %v3206_v39 = vadd.f32 %v1659_v12, %v1651_v11  ;;  %v1901_v11 = vld [vmem:[#allocation4 + $0x20] sm:$0xff]  ;;  %v1902_v12 = vld [vmem:[#allocation4 + $0x28] sm:$0xff] }
0x1208   :  { %2690 = vtanh.f32 %v3206_v39 }
0x1215   :  { %v2691_v14 = vpop.eup %2690 }
0x1216   :  { %1664 = vrot.lane.b32.xlu0 %v2691_v14, %s2718_s0  ;;  %v1904_v14 = vld [vmem:[#allocation4 + $0x38] sm:$0xff] }
0x126b   :  { %v1648_v15 = vpop.permute.xlu1 %1647 }
0x126c   :  { %v1650_v43 = vmul.f32 %v2683_v59, %v1648_v15  ;;  %v1907_v59 = vld [vmem:[%s3311_s6 + $0x10] sm:$0xff] }
0x126e   :  { %1669 = vrot.lane.b32.xlu1 %v1650_v43, %s2719_s4 }
0x1288   :  { %v1665_v44 = vpop.permute.xlu0 %1664 }
0x1289   :  { %v1667_v55 = vmul.f32 %v2687_v38, %v1665_v44 }
0x128b   :  { %1675 = vrot.lane.b32.xlu0 %v1667_v55, %s2719_s4 }
0x12e0   :  { %v1670_v46 = vpop.permute.xlu1 %1669 }
0x12e1   :  { %1673 = vst.msk [vmem:[#allocation3 + $0x30] sm:$0xff] %vm223_vm2, %v1670_v46  ;;  %2523 = vmatmul.mubr.msk.f32.vlgmr.msra.gmra.mxu0 %vm223_vm2, %v1670_v46  ;;  %v2255_v46 = vld [vmem:[%s3312_s7] ss:$0 sm:$0xff] }
0x12e2   :  { %2537 = vmatpush3.msra.mxu0 %v1908_v45 }
0x12e3   :  { %2538 = vmatprep.subr.mxu0 %v1907_v59 }
0x12e4   :  { %2539 = vmatpush3.msra.mxu0 %v1907_v59 }
0x12e5   :  { %2540 = vmatprep.subr.mxu0 %v1906_v32 }
0x12e6   :  { %2541 = vmatpush3.msra.mxu0 %v1906_v32 }
0x12e7   :  { %2542 = vmatprep.subr.mxu0 %v1905_v33 }
0x12e8   :  { %v1891_v60 = vld [vmem:[#allocation3 + $0x30] sm:$0xff]  ;;  %2543 = vmatpush3.msra.mxu0 %v1905_v33 }
0x12fd   :  { %v1676_v47 = vpop.permute.xlu0 %1675 }
0x12fe   :  { %1679 = vst.msk [vmem:[#allocation4 + $0x8] sm:$0xff] %vm223_vm2, %v1676_v47  ;;  %2534 = vmatmul.mubr.msk.f32.vlgmr.msra.gmra.mxu1 %vm223_vm2, %v1676_v47 }
0x12ff   :  { %2557 = vmatpush3.msra.mxu1 %v1896_v41  ;;  %2564 = vmatprep.mubr.msk.f32.mxu1 %vm223_vm2, %v1885_v49 }
0x1300   :  { %2558 = vmatprep.subr.mxu1 %v1895_v40 }
0x1301   :  { %2559 = vmatpush3.msra.mxu1 %v1895_v40 }
0x1302   :  { %2560 = vmatprep.subr.mxu1 %v1894_v42 }
0x1303   :  { %2561 = vmatpush3.msra.mxu1 %v1894_v42 }
0x1304   :  { %2562 = vmatprep.subr.mxu1 %v1893_v51 }
0x1305   :  { %2563 = vmatpush3.msra.mxu1 %v1893_v51  ;;  %v1898_v5 = vld [vmem:[#allocation4 + $0x8] sm:$0xff] }
0x1306   :  { %2565 = vmatmul.mubr.msk.f32.vlgmr.msra.gmra.mxu1 %vm223_vm2, %v1886_v52 }
0x1307   :  { %2567 = vmatprep.mubr.msk.f32.mxu1 %vm223_vm2, %v1887_v54 }
0x130a   :  { %2568 = vmatmul.mubr.msk.f32.gmra.mxu1 %vm223_vm2, %v1888_v57 }
0x130b   :  { %2570 = vmatprep.mubr.msk.f32.mxu1 %vm223_vm2, %v1889_v56 }
0x130e   :  { %2571 = vmatmul.mubr.msk.f32.gmra.mxu1 %vm223_vm2, %v1890_v58 }
0x130f   :  { %2573 = vmatprep.mubr.msk.f32.mxu1 %vm223_vm2, %v1891_v60 }
0x13a1   :  { %v1750_v62 = vpop.f32.mrf.mxu0 }
0x13a2   :  { %v1751_v1 = vadd.f32 %v1750_v62, %v2931_v63 }
0x13a3   :  { %v2524_v35 = vpop.f32.mrf.mxu0 }
0x13a4   :  { %2692 = vtanh.f32 %v1751_v1  ;;  %v2237_v10 = vmul.f32 -1.442695, %v1751_v1 }
0x13b1   :  { %v2693_v3 = vpop.eup %2692 }
0x13b2   :  { %1842 = vrot.lane.b32.xlu1 %v2693_v3, %s2718_s0 }
0x13be   :  { %v1822_v4 = vpop.f32.mrf.mxu1 }
0x13bf   :  { %v1823_v6 = vadd.f32 %v1822_v4, %v2904_v31 }
0x13c0   :  { %v2535_v7 = vpop.f32.mrf.mxu1 }
0x13c1   :  { %2694 = vtanh.f32 %v1823_v6  ;;  %v2238_v17 = vmul.f32 -1.442695, %v1823_v6 }
0x13c2   :  { %2696 = vpow2.f32 %v2237_v10 }
0x13c6   :  { %v2566_v41 = vpop.f32.mrf.mxu1 }
0x13c8   :  { %v2128_v15 = vpop.f32.mrf.mxu1 }
0x13ca   :  { %v2569_v43 = vpop.f32.mrf.mxu1 }
0x13cc   :  { %v2138_v44 = vpop.f32.mrf.mxu1 }
0x13ce   :  { %v2695_v61 = vpop.eup %2694  ;;  %v2572_v51 = vpop.f32.mrf.mxu1 }
0x13cf   :  { %1859 = vrot.lane.b32.xlu0 %v2695_v61, %s2718_s0  ;;  %v2697_v13 = vpop.eup %2696 }
0x13d0   :  { %v1829_v16 = vadd.f32 1.0, %v2697_v13  ;;  %v2148_v62 = vpop.f32.mrf.mxu1 }
0x13d2   :  { %2698 = vrcp.f32 %v1829_v16 }
0x13d3   :  { %2700 = vpow2.f32 %v2238_v17 }
0x13df   :  { %v2699_v63 = vpop.eup %2698 }
0x13e0   :  { %v2701_v19 = vpop.eup %2700  ;;  %v1840_v22 = vmul.f32 %v2699_v63, %v3201_v8  ;;  %v1899_v8 = vld [vmem:[#allocation4 + $0x10] sm:$0xff] }
0x13e1   :  { %v1836_v20 = vadd.f32 1.0, %v2701_v19 }
0x13e3   :  { %2702 = vrcp.f32 %v1836_v20 }
0x13f0   :  { %v2703_v31 = vpop.eup %2702 }
0x13f1   :  { %v1857_v26 = vmul.f32 %v2703_v31, %v3206_v39  ;;  %v1903_v39 = vld [vmem:[#allocation4 + $0x30] sm:$0xff] }
0x1424   :  { %v1843_v50 = vpop.permute.xlu1 %1842 }
0x1425   :  { %v1845_v18 = vmul.f32 %v2699_v63, %v1843_v50 }
0x1427   :  { %1847 = vrot.lane.b32.xlu1 %v1845_v18, %s2719_s4 }
0x1441   :  { %v1860_v21 = vpop.permute.xlu0 %1859 }
0x1442   :  { %v1862_v48 = vmul.f32 %v2703_v31, %v1860_v21 }
0x1444   :  { %1864 = vrot.lane.b32.xlu0 %v1862_v48, %s2719_s4 }
0x1499   :  { %v1848_v23 = vpop.permute.xlu1 %1847 }
0x149a   :  { %v1850_v24 = vadd.f32 %v1848_v23, %v1840_v22 }
0x149c   :  { %2704 = vtanh.f32 %v1850_v24 }
0x14a9   :  { %v2705_v25 = vpop.eup %2704 }
0x14aa   :  { %1853 = vrot.lane.b32.xlu1 %v2705_v25, %s2718_s0 }
0x14b6   :  { %v1865_v27 = vpop.permute.xlu0 %1864 }
0x14b7   :  { %v1867_v28 = vadd.f32 %v1865_v27, %v1857_v26 }
0x14b9   :  { %2706 = vtanh.f32 %v1867_v28 }
0x14c6   :  { %v2707_v0 = vpop.eup %2706 }
0x14c7   :  { %1870 = vrot.lane.b32.xlu0 %v2707_v0, %s2718_s0 }
0x151c   :  { %v1854_v29 = vpop.permute.xlu1 %1853 }
0x151d   :  { %v1856_v30 = vmul.f32 %v2699_v63, %v1854_v29 }
0x151f   :  { %1875 = vrot.lane.b32.xlu1 %v1856_v30, %s2719_s4 }
0x1539   :  { %v1871_v34 = vpop.permute.xlu0 %1870 }
0x153a   :  { %v1873_v36 = vmul.f32 %v2703_v31, %v1871_v34 }
0x153c   :  { %1881 = vrot.lane.b32.xlu0 %v1873_v36, %s2719_s4 }
0x1591   :  { %v1876_v38 = vpop.permute.xlu1 %1875 }
0x1592   :  { %1879 = vst.msk [vmem:[#allocation3 + $0x38] sm:$0xff] %vm223_vm2, %v1876_v38 }
0x1599   :  { %v1892_v53 = vld [vmem:[#allocation3 + $0x38] sm:$0xff] }
0x159a   :  { %2574 = vmatmul.mubr.msk.f32.gmra.mxu1 %vm223_vm2, %v1892_v53 }
0x15ae   :  { %v1882_v37 = vpop.permute.xlu0 %1881 }
0x15af   :  { %1884 = vst.msk [vmem:[#allocation4] sm:$0xff] %vm223_vm2, %v1882_v37 }
0x15b6   :  { %v1897_v2 = vld [vmem:[#allocation4] sm:$0xff] }
0x15b7   :  { %2544 = vmatprep.mubr.msk.f32.mxu0 %vm223_vm2, %v1897_v2 }
0x15b8   :  { %2545 = vmatmul.mubr.msk.f32.vlgmr.msra.gmra.mxu0 %vm223_vm2, %v1898_v5 }
0x15b9   :  { %2547 = vmatprep.mubr.msk.f32.mxu0 %vm223_vm2, %v1899_v8 }
0x15bc   :  { %2548 = vmatmul.mubr.msk.f32.gmra.mxu0 %vm223_vm2, %v1900_v9 }
0x15bd   :  { %2550 = vmatprep.mubr.msk.f32.mxu0 %vm223_vm2, %v1901_v11 }
0x15c0   :  { %2551 = vmatmul.mubr.msk.f32.gmra.mxu0 %vm223_vm2, %v1902_v12 }
0x15c1   :  { %2553 = vmatprep.mubr.msk.f32.mxu0 %vm223_vm2, %v1903_v39 }
0x15c4   :  { %2554 = vmatmul.mubr.msk.f32.gmra.mxu0 %vm223_vm2, %v1904_v14 }
0x165a   :  { %v2575_v4 = vpop.f32.mrf.mxu1 }
0x165c   :  { %v2158_v17 = vpop.f32.mrf.mxu1 }
0x1678   :  { %v2546_v55 = vpop.f32.mrf.mxu0 }
0x1679   :  { %v2134_v47 = vadd.f32 %v2566_v41, %v2546_v55 }
0x167a   :  { %v1999_v40 = vpop.f32.mrf.mxu0 }
0x167b   :  { %v2175_v49 = vadd.f32 %v2255_v46, %v2134_v47  ;;  %v2129_v42 = vadd.f32 %v2128_v15, %v1999_v40 }
0x167c   :  { %v2549_v52 = vpop.f32.mrf.mxu0 }
0x167d   :  { %2183 = vst.msk [vmem:[%s3313_s8 + $0x8] sm:$0xff] %vm53_vm0, %v2175_v49  ;;  %v2174_v54 = vadd.f32 %v2255_v46, %v2129_v42  ;;  %v2144_v57 = vadd.f32 %v2569_v43, %v2549_v52 }
0x167e   :  { %v2009_v56 = vpop.f32.mrf.mxu0 }
0x167f   :  { %2182 = vst.msk [vmem:[%s3313_s8] sm:$0xff] %vm53_vm0, %v2174_v54  ;;  %v2177_v58 = vadd.f32 %v2255_v46, %v2144_v57  ;;  %v2139_v60 = vadd.f32 %v2138_v44, %v2009_v56 }
0x1680   :  { %v2552_v1 = vpop.f32.mrf.mxu0 }
0x1681   :  { %2185 = vst.msk [vmem:[%s3313_s8 + $0x18] sm:$0xff] %vm53_vm0, %v2177_v58  ;;  %v2176_v35 = vadd.f32 %v2255_v46, %v2139_v60  ;;  %v2154_v3 = vadd.f32 %v2572_v51, %v2552_v1 }
0x1682   :  { %v2019_v6 = vpop.f32.mrf.mxu0 }
0x1683   :  { %2184 = vst.msk [vmem:[%s3313_s8 + $0x10] sm:$0xff] %vm53_vm0, %v2176_v35  ;;  %v2179_v7 = vadd.f32 %v2255_v46, %v2154_v3  ;;  %v2149_v61 = vadd.f32 %v2148_v62, %v2019_v6 }
0x1684   :  { %v2555_v10 = vpop.f32.mrf.mxu0 }
0x1685   :  { %2187 = vst.msk [vmem:[%s3313_s8 + $0x28] sm:$0xff] %vm53_vm0, %v2179_v7  ;;  %v2178_v13 = vadd.f32 %v2255_v46, %v2149_v61  ;;  %v2164_v16 = vadd.f32 %v2575_v4, %v2555_v10 }
0x1686   :  { %v2029_v63 = vpop.f32.mrf.mxu0 }
0x1687   :  { %2186 = vst.msk [vmem:[%s3313_s8 + $0x20] sm:$0xff] %vm53_vm0, %v2178_v13  ;;  %v2181_v50 = vadd.f32 %v2255_v46, %v2164_v16  ;;  %v2159_v18 = vadd.f32 %v2158_v17, %v2029_v63 }
0x1689   :  { %2189 = vst.msk [vmem:[%s3313_s8 + $0x38] sm:$0xff] %vm53_vm0, %v2181_v50  ;;  %v2180_v19 = vadd.f32 %v2255_v46, %v2159_v18 }
0x168b   :  { %2188 = vst.msk [vmem:[%s3313_s8 + $0x30] sm:$0xff] %vm53_vm0, %v2180_v19 }

</bundles_post_ra>
